<compile_context>
chip_gen: v7x
topology: tpu7x:2x2x1
jax: 0.10.0
libtpu: 0.0.40
codegen_flags: <defaults>
</compile_context>

<pallas_src>
import jax
import jax.numpy as jnp
from jax import lax
from jax.experimental import pallas as pl
from jax.experimental.pallas import tpu as pltpu


def _round_up(v, m):
    return ((v + m - 1) // m) * m


def _pick_row_tile(Ho):
    """Largest multiple-of-8 output-row tile (<=32) that splits Ho into >=2 tiles."""
    for th in (32, 24, 16, 8):
        if Ho % th == 0 and Ho // th >= 2:
            return th
    return Ho  # single tile covering the whole height (full-dim block is always legal)


def _make_block_kernel(H, W, Cin, Cexp, Cout, stride, TH, TH_in, Wp,
                       shortcut_kind, lane_dense_out):
    s = stride
    Wo = (W - 1) // s + 1

    def dsl(start, size):
        # strided ref slice for the stride-2 depthwise taps (plain ds for s==1)
        return pl.ds(start, size) if s == 1 else pl.ds(start, size, s)

    def body(x_ref, w1, s1, b1, w2, s2, b2, w3, s3, b3, sc_params, out_ref, h1s_ref):
        t = pl.program_id(1)
        row0 = t * (TH * s)      # first padded-input row of this tile's halo window

        # ---- expand: 1x1 conv (bf16 MXU, f32 accum) + BN + ReLU over the halo'd slab
        xw = x_ref[0, pl.ds(row0, TH_in), :, :]                    # (TH_in, Wp, Cin) f32
        h1 = jnp.dot(xw.reshape(TH_in * Wp, Cin).astype(jnp.bfloat16), w1,
                     preferred_element_type=jnp.float32)
        h1 = jnp.maximum(h1 * s1 + b1, 0.0).reshape(TH_in, Wp, Cexp)

        # positions that are conv zero-padding must be zero *after* bn1/relu
        # (bn1 of a zero row is relu(b1), not 0), so mask them before the taps.
        prow = row0 + lax.broadcasted_iota(jnp.int32, (TH_in, Wp, 1), 0)
        pcol = lax.broadcasted_iota(jnp.int32, (TH_in, Wp, 1), 1)
        inside = (prow >= 1) & (prow <= H) & (pcol >= 1) & (pcol <= W)
        h1s_ref[...] = jnp.where(inside, h1, 0.0)                  # padded slab in VMEM

        # ---- depthwise 3x3 (stride s) + BN + ReLU: 9 (strided) VMEM taps, f32 VPU MACs
        acc = jnp.zeros((TH, Wo, Cexp), jnp.float32)
        for dy in range(3):
            for dx in range(3):
                tap = h1s_ref[dsl(dy, TH), dsl(dx, Wo), :]         # (TH, Wo, Cexp)
                acc = acc + tap * w2[3 * dy + dx]
        h2 = jnp.maximum(acc * s2 + b2, 0.0)

        # ---- project: 1x1 conv (bf16 MXU, f32 accum) + BN
        h3 = jnp.dot(h2.reshape(TH * Wo, Cexp).astype(jnp.bfloat16), w3,
                     preferred_element_type=jnp.float32)
        h3 = h3 * s3 + b3

        # ---- shortcut (stride == 1 only); re-read x here to keep its live range short
        if s == 1:
            xs = x_ref[0, pl.ds(row0 + 1, TH), pl.ds(1, W), :]     # (TH, W == Wo, Cin)
            if shortcut_kind == "conv":
                wsc, ssc, bsc = sc_params
                sc = jnp.dot(xs.reshape(TH * Wo, Cin).astype(jnp.bfloat16), wsc,
                             preferred_element_type=jnp.float32)
                sc = sc * ssc + bsc
            else:                                                  # identity (Cin == Cout)
                sc = xs.reshape(TH * Wo, Cin)
            h3 = h3 + sc

        if lane_dense_out:
            # lane-dense store: (TH*Wo, Cout) -> (1, TH, Wo*Cout) (same row-major bytes)
            out_ref[...] = h3.reshape(1, TH, Wo * Cout)
        else:
            out_ref[...] = h3.reshape(1, TH, Wo, Cout)

    if shortcut_kind == "conv":
        def kernel(x_ref, w1_ref, s1_ref, b1_ref, w2_ref, s2_ref, b2_ref,
                   w3_ref, s3_ref, b3_ref, wsc_ref, ssc_ref, bsc_ref,
                   out_ref, h1s_ref):
            body(x_ref, w1_ref[...], s1_ref[...], b1_ref[...],
                 w2_ref[...], s2_ref[...], b2_ref[...],
                 w3_ref[...], s3_ref[...], b3_ref[...],
                 (wsc_ref[...], ssc_ref[...], bsc_ref[...]), out_ref, h1s_ref)
    else:
        def kernel(x_ref, w1_ref, s1_ref, b1_ref, w2_ref, s2_ref, b2_ref,
                   w3_ref, s3_ref, b3_ref, out_ref, h1s_ref):
            body(x_ref, w1_ref[...], s1_ref[...], b1_ref[...],
                 w2_ref[...], s2_ref[...], b2_ref[...],
                 w3_ref[...], s3_ref[...], b3_ref[...], None, out_ref, h1s_ref)

    return kernel


def _fold_bn(bn_params, eps=1e-5):
    gamma, beta, mean, var = bn_params
    scale = gamma / jnp.sqrt(var + eps)
    bias = beta - mean * scale
    return (scale.reshape(1, -1).astype(jnp.float32),
            bias.reshape(1, -1).astype(jnp.float32))


def mobilenetv2_block_nhwc(x_nhwc, params, stride, lane_dense_out=True):
    """Fused Block.forward on NHWC activations (inference-mode BN)."""
    N, H, W, Cin = x_nhwc.shape
    Cexp = params['w1'].shape[0]
    Cout = params['w3'].shape[0]
    s = stride
    Ho = (H - 1) // s + 1
    Wo = (W - 1) // s + 1

    if stride != 1:
        shortcut_kind = "none"
    elif 'wsc' in params:
        shortcut_kind = "conv"
    else:
        shortcut_kind = "identity"
        assert Cin == Cout, "identity shortcut requires in_planes == out_planes"

    # Spatial zero padding is applied once in the wrapper (1 top/left + whatever the
    # last 3x3 window needs bottom/right; right pad rounded up so the padded width is
    # a multiple of 8 sublanes). Padded positions are re-zeroed after the expand
    # stage inside the kernel (see mask above).
    pad_b = max(0, (Ho - 1) * s + 2 - H)
    pad_r = max(0, (Wo - 1) * s + 2 - W)
    Hp = 1 + H + pad_b
    Wp = _round_up(1 + W + pad_r, 8)
    pad_r = Wp - 1 - W

    TH = _pick_row_tile(Ho)                  # output rows per grid step
    TH_in = (TH - 1) * s + 3                 # halo'd padded-input rows per step
    n_tiles = Ho // TH

    x = jnp.pad(x_nhwc.astype(jnp.float32),
                ((0, 0), (1, pad_b), (1, pad_r), (0, 0)))

    # 1x1-conv weights as bf16 matmul operands; depthwise taps stay f32 (VPU);
    # BN folded to per-channel f32 scale/bias.
    w1 = params['w1'].reshape(Cexp, Cin).T.astype(jnp.bfloat16)     # (Cin, Cexp)
    w2 = params['w2'].reshape(Cexp, 9).T.astype(jnp.float32)        # (9, Cexp)
    w3 = params['w3'].reshape(Cout, Cexp).T.astype(jnp.bfloat16)    # (Cexp, Cout)
    s1, b1 = _fold_bn(params['bn1'])
    s2, b2 = _fold_bn(params['bn2'])
    s3, b3 = _fold_bn(params['bn3'])

    def rep(shape):  # replicated (fetched once, revisited) operand
        return pl.BlockSpec(shape, lambda n, t: (0,) * len(shape))

    in_specs = [
        # full padded image per batch element; index map ignores t, so Pallas
        # re-uses the block (no re-DMA) across the row tiles of one image.
        pl.BlockSpec((1, Hp, Wp, Cin), lambda n, t: (n, 0, 0, 0)),
        rep((Cin, Cexp)), rep((1, Cexp)), rep((1, Cexp)),
        rep((9, Cexp)), rep((1, Cexp)), rep((1, Cexp)),
        rep((Cexp, Cout)), rep((1, Cout)), rep((1, Cout)),
    ]
    args = [x, w1, s1, b1, w2, s2, b2, w3, s3, b3]
    if shortcut_kind == "conv":
        wsc = params['wsc'].reshape(Cout, Cin).T.astype(jnp.bfloat16)
        ssc, bsc = _fold_bn(params['bns'])
        in_specs += [rep((Cin, Cout)), rep((1, Cout)), rep((1, Cout))]
        args += [wsc, ssc, bsc]

    if lane_dense_out:
        out_shape = jax.ShapeDtypeStruct((N, Ho, Wo * Cout), jnp.float32)
        out_spec = pl.BlockSpec((1, TH, Wo * Cout), lambda n, t: (n, t, 0))
    else:
        out_shape = jax.ShapeDtypeStruct((N, Ho, Wo, Cout), jnp.float32)
        out_spec = pl.BlockSpec((1, TH, Wo, Cout), lambda n, t: (n, t, 0, 0))

    kernel = _make_block_kernel(H, W, Cin, Cexp, Cout, stride,
                                TH, TH_in, Wp, shortcut_kind, lane_dense_out)

    out = pl.pallas_call(
        kernel,
        out_shape=out_shape,
        grid_spec=pltpu.PrefetchScalarGridSpec(
            num_scalar_prefetch=0,
            grid=(N, n_tiles),
            in_specs=in_specs,
            out_specs=out_spec,
            scratch_shapes=[pltpu.VMEM((TH_in, Wp, Cexp), jnp.float32)],
        ),
        compiler_params=pltpu.CompilerParams(
            dimension_semantics=("parallel", "parallel")),
    )(*args)
    return out.reshape(N, Ho, Wo, Cout)


def _block_nchw(x_nchw, params, stride, lane_dense_out):
    # NCHW (PyTorch) boundary. In a full network keep activations NHWC between
    # blocks and convert once per network, not per block.
    x = jnp.transpose(x_nchw, (0, 2, 3, 1))
    y = mobilenetv2_block_nhwc(x, params, stride, lane_dense_out)
    return jnp.transpose(y, (0, 3, 1, 2))


_block_nchw_jit = jax.jit(_block_nchw, static_argnums=(2, 3))
_lane_dense_supported = True


def mobilenetv2_block(x_nchw, params, stride):
    """Pallas implementation of Block.forward (inference-mode BN), NCHW in/out."""
    global _lane_dense_supported
    if _lane_dense_supported:
        try:
            return _block_nchw_jit(x_nchw, params, stride, True)
        except Exception:
            # Mosaic build without support for the lane-dense store relayout:
            # fall back to the plain 4-D output block.
            _lane_dense_supported = False
    return _block_nchw_jit(x_nchw, params, stride, False)


# --------------------- reference (plain JAX) + params ---------------------

def ref_block(x, params, stride, eps=1e-5, mxu_bf16=False):
    """Plain-JAX reference. With mxu_bf16=True the 1x1 convs use bf16-rounded
    operands (matching the kernel's MXU precision); depthwise conv and all
    BN/ReLU math stay f32."""
    rnd = ((lambda a: a.astype(jnp.bfloat16).astype(jnp.float32))
           if mxu_bf16 else (lambda a: a))

    def conv1x1(inp, w):
        return lax.conv_general_dilated(
            rnd(inp), rnd(w), (1, 1), 'VALID',
            dimension_numbers=('NCHW', 'OIHW', 'NCHW'),
            precision=lax.Precision.HIGHEST)

    def dwconv(inp, w, st):
        return lax.conv_general_dilated(
            inp, w, (st, st), [(1, 1), (1, 1)],
            dimension_numbers=('NCHW', 'OIHW', 'NCHW'),
            feature_group_count=w.shape[0],
            precision=lax.Precision.HIGHEST)

    def bn(inp, p):
        gamma, beta, mean, var = p
        rs = lambda v: v.reshape(1, -1, 1, 1)
        return (inp - rs(mean)) / jnp.sqrt(rs(var) + eps) * rs(gamma) + rs(beta)

    out = jax.nn.relu(bn(conv1x1(x, params['w1']), params['bn1']))
    out = jax.nn.relu(bn(dwconv(out, params['w2'], stride), params['bn2']))
    out = bn(conv1x1(out, params['w3']), params['bn3'])
    if stride == 1:
        sc = bn(conv1x1(x, params['wsc']), params['bns']) if 'wsc' in params else x
        out = out + sc
    return out


def init_block_params(key, in_planes, out_planes, expansion, stride):
    planes = expansion * in_planes
    ks = jax.random.split(key, 8)

    def conv_w(k, cout, cin, kh, kw):
        fan_in = float(cin * kh * kw)
        return jax.random.normal(k, (cout, cin, kh, kw), jnp.float32) / jnp.sqrt(fan_in)

    def bn_p(k, c):
        k1, k2, k3, k4 = jax.random.split(k, 4)
        gamma = 1.0 + 0.1 * jax.random.normal(k1, (c,), jnp.float32)
        beta = 0.1 * jax.random.normal(k2, (c,), jnp.float32)
        mean = 0.1 * jax.random.normal(k3, (c,), jnp.float32)
        var = 0.5 + jax.random.uniform(k4, (c,), jnp.float32)
        return (gamma, beta, mean, var)

    params = {
        'w1': conv_w(ks[0], planes, in_planes, 1, 1),
        'bn1': bn_p(ks[1], planes),
        'w2': conv_w(ks[2], planes, 1, 3, 3),   # depthwise (groups = planes)
        'bn2': bn_p(ks[3], planes),
        'w3': conv_w(ks[4], out_planes, planes, 1, 1),
        'bn3': bn_p(ks[5], out_planes),
    }
    if stride == 1 and in_planes != out_planes:
        params['wsc'] = conv_w(ks[6], out_planes, in_planes, 1, 1)
        params['bns'] = bn_p(ks[7], out_planes)
    return params


if __name__ == "__main__":
    key = jax.random.PRNGKey(0)
    N, H, W = 2, 16, 16
    cases = [
        # (in_planes, out_planes, expansion, stride)
        (4, 8, 2, 1),   # stride 1, 1x1-conv shortcut; Ho=16 -> 2 row tiles of 8
        (8, 8, 2, 1),   # stride 1, identity shortcut
        (4, 8, 2, 2),   # stride 2, no shortcut; exercises strided taps
    ]
    for (cin, cout, expansion, st) in cases:
        key, kx, kp = jax.random.split(key, 3)
        x = jax.random.normal(kx, (N, cin, H, W), jnp.float32)
        params = init_block_params(kp, cin, cout, expansion, st)

        out = jax.block_until_ready(mobilenetv2_block(x, params, st))

        ref_m = ref_block(x, params, st, mxu_bf16=True)    # matches kernel MXU precision
        ref_f = ref_block(x, params, st, mxu_bf16=False)   # full-f32 ground truth
        assert out.shape == ref_m.shape, (out.shape, ref_m.shape)

        err_m = float(jnp.max(jnp.abs(out - ref_m)))
        assert jnp.allclose(out, ref_m, atol=3e-2, rtol=3e-2), \
            f"(stride={st}) mismatch vs matched-precision ref, max abs err={err_m}"
        err_f = float(jnp.max(jnp.abs(out - ref_f)))
        assert jnp.allclose(out, ref_f, atol=2e-1, rtol=2e-1), \
            f"(stride={st}) coarse bf16-vs-f32 sanity check failed, max abs err={err_f}"

    print("KERNEL_OK")
</pallas_src>

<mosaic_0001>
module attributes {stable_mosaic.version = 11 : i64} {
  func.func @kernel(%arg0: i32, %arg1: i32, %arg2: memref<1x18x24x4xf32, #tpu.memory_space<vmem>>, %arg3: memref<4x8xbf16, #tpu.memory_space<vmem>>, %arg4: memref<1x8xf32, #tpu.memory_space<vmem>>, %arg5: memref<1x8xf32, #tpu.memory_space<vmem>>, %arg6: memref<9x8xf32, #tpu.memory_space<vmem>>, %arg7: memref<1x8xf32, #tpu.memory_space<vmem>>, %arg8: memref<1x8xf32, #tpu.memory_space<vmem>>, %arg9: memref<8x8xbf16, #tpu.memory_space<vmem>>, %arg10: memref<1x8xf32, #tpu.memory_space<vmem>>, %arg11: memref<1x8xf32, #tpu.memory_space<vmem>>, %arg12: memref<4x8xbf16, #tpu.memory_space<vmem>>, %arg13: memref<1x8xf32, #tpu.memory_space<vmem>>, %arg14: memref<1x8xf32, #tpu.memory_space<vmem>>, %arg15: memref<1x8x128xf32, #tpu.memory_space<vmem>>, %arg16: memref<10x24x8xf32, #tpu.memory_space<vmem>>) attributes {dimension_semantics = [#tpu.dimension_semantics<parallel>, #tpu.dimension_semantics<parallel>], iteration_bounds = array<i64: 2, 2>, scalar_prefetch = 0 : i64, scratch_operands = 1 : i64, tpu.core_type = #tpu.core_type<tc>, window_params = [{transform_indices = @transform_0, window_bounds = array<i64: 1, 18, 24, 4>}, {pipeline_mode = #tpu.pipeline_mode<synchronous>, transform_indices = @transform_1, window_bounds = array<i64: 4, 8>}, {pipeline_mode = #tpu.pipeline_mode<synchronous>, transform_indices = @transform_2, window_bounds = array<i64: 1, 8>}, {pipeline_mode = #tpu.pipeline_mode<synchronous>, transform_indices = @transform_3, window_bounds = array<i64: 1, 8>}, {pipeline_mode = #tpu.pipeline_mode<synchronous>, transform_indices = @transform_4, window_bounds = array<i64: 9, 8>}, {pipeline_mode = #tpu.pipeline_mode<synchronous>, transform_indices = @transform_5, window_bounds = array<i64: 1, 8>}, {pipeline_mode = #tpu.pipeline_mode<synchronous>, transform_indices = @transform_6, window_bounds = array<i64: 1, 8>}, {pipeline_mode = #tpu.pipeline_mode<synchronous>, transform_indices = @transform_7, window_bounds = array<i64: 8, 8>}, {pipeline_mode = #tpu.pipeline_mode<synchronous>, transform_indices = @transform_8, window_bounds = array<i64: 1, 8>}, {pipeline_mode = #tpu.pipeline_mode<synchronous>, transform_indices = @transform_9, window_bounds = array<i64: 1, 8>}, {pipeline_mode = #tpu.pipeline_mode<synchronous>, transform_indices = @transform_10, window_bounds = array<i64: 4, 8>}, {pipeline_mode = #tpu.pipeline_mode<synchronous>, transform_indices = @transform_11, window_bounds = array<i64: 1, 8>}, {pipeline_mode = #tpu.pipeline_mode<synchronous>, transform_indices = @transform_12, window_bounds = array<i64: 1, 8>}, {transform_indices = @transform_13, window_bounds = array<i64: 1, 8, 128>}]} {
    %c0 = arith.constant 0 : index
    %c0_0 = arith.constant 0 : index
    %0 = vector.load %arg3[%c0, %c0_0] : memref<4x8xbf16, #tpu.memory_space<vmem>>, vector<4x8xbf16>
    %c0_1 = arith.constant 0 : index
    %c0_2 = arith.constant 0 : index
    %1 = vector.load %arg4[%c0_1, %c0_2] : memref<1x8xf32, #tpu.memory_space<vmem>>, vector<1x8xf32>
    %c0_3 = arith.constant 0 : index
    %c0_4 = arith.constant 0 : index
    %2 = vector.load %arg5[%c0_3, %c0_4] : memref<1x8xf32, #tpu.memory_space<vmem>>, vector<1x8xf32>
    %c0_5 = arith.constant 0 : index
    %c0_6 = arith.constant 0 : index
    %3 = vector.load %arg6[%c0_5, %c0_6] : memref<9x8xf32, #tpu.memory_space<vmem>>, vector<9x8xf32>
    %c0_7 = arith.constant 0 : index
    %c0_8 = arith.constant 0 : index
    %4 = vector.load %arg7[%c0_7, %c0_8] : memref<1x8xf32, #tpu.memory_space<vmem>>, vector<1x8xf32>
    %c0_9 = arith.constant 0 : index
    %c0_10 = arith.constant 0 : index
    %5 = vector.load %arg8[%c0_9, %c0_10] : memref<1x8xf32, #tpu.memory_space<vmem>>, vector<1x8xf32>
    %c0_11 = arith.constant 0 : index
    %c0_12 = arith.constant 0 : index
    %6 = vector.load %arg9[%c0_11, %c0_12] : memref<8x8xbf16, #tpu.memory_space<vmem>>, vector<8x8xbf16>
    %c0_13 = arith.constant 0 : index
    %c0_14 = arith.constant 0 : index
    %7 = vector.load %arg10[%c0_13, %c0_14] : memref<1x8xf32, #tpu.memory_space<vmem>>, vector<1x8xf32>
    %c0_15 = arith.constant 0 : index
    %c0_16 = arith.constant 0 : index
    %8 = vector.load %arg11[%c0_15, %c0_16] : memref<1x8xf32, #tpu.memory_space<vmem>>, vector<1x8xf32>
    %c0_17 = arith.constant 0 : index
    %c0_18 = arith.constant 0 : index
    %9 = vector.load %arg12[%c0_17, %c0_18] : memref<4x8xbf16, #tpu.memory_space<vmem>>, vector<4x8xbf16>
    %c0_19 = arith.constant 0 : index
    %c0_20 = arith.constant 0 : index
    %10 = vector.load %arg13[%c0_19, %c0_20] : memref<1x8xf32, #tpu.memory_space<vmem>>, vector<1x8xf32>
    %c0_21 = arith.constant 0 : index
    %c0_22 = arith.constant 0 : index
    %11 = vector.load %arg14[%c0_21, %c0_22] : memref<1x8xf32, #tpu.memory_space<vmem>>, vector<1x8xf32>
    %c8_i32 = arith.constant 8 : i32
    %12 = arith.muli %arg1, %c8_i32 : i32
    %c0_23 = arith.constant 0 : index
    %13 = arith.index_cast %12 : i32 to index
    %c0_24 = arith.constant 0 : index
    %c0_25 = arith.constant 0 : index
    %14 = vector.load %arg2[%c0_23, %13, %c0_24, %c0_25] : memref<1x18x24x4xf32, #tpu.memory_space<vmem>>, vector<1x10x24x4xf32>
    %15 = vector.shape_cast %14 : vector<1x10x24x4xf32> to vector<10x24x4xf32>
    %16 = vector.shape_cast %15 : vector<10x24x4xf32> to vector<240x4xf32>
    %17 = arith.truncf %16 : vector<240x4xf32> to vector<240x4xbf16>
    %cst = arith.constant dense<0.000000e+00> : vector<240x8xf32>
    %18 = tpu.matmul %17, %0, %cst {dimension_numbers = #tpu.dot_dimension_numbers<[1], [0], [0], [1], [0, 0, 1, 1], [], []>} : vector<240x4xbf16>, vector<4x8xbf16>, vector<240x8xf32> -> vector<240x8xf32>
    %19 = vector.broadcast %1 : vector<1x8xf32> to vector<240x8xf32>
    %20 = arith.mulf %18, %19 : vector<240x8xf32>
    %21 = vector.broadcast %2 : vector<1x8xf32> to vector<240x8xf32>
    %22 = arith.addf %20, %21 : vector<240x8xf32>
    %cst_26 = arith.constant 0.000000e+00 : f32
    %23 = vector.broadcast %cst_26 : f32 to vector<240x8xf32>
    %24 = arith.maximumf %22, %23 : vector<240x8xf32>
    %25 = vector.shape_cast %24 : vector<240x8xf32> to vector<10x24x8xf32>
    %26 = tpu.iota {dimensions = array<i32: 0>} : vector<10x24x1xi32>
    %27 = vector.broadcast %12 : i32 to vector<10x24x1xi32>
    %28 = arith.addi %27, %26 : vector<10x24x1xi32>
    %29 = tpu.iota {dimensions = array<i32: 1>} : vector<10x24x1xi32>
    %c1_i32 = arith.constant 1 : i32
    %30 = vector.broadcast %c1_i32 : i32 to vector<10x24x1xi32>
    %31 = arith.cmpi sge, %28, %30 : vector<10x24x1xi32>
    %c16_i32 = arith.constant 16 : i32
    %32 = vector.broadcast %c16_i32 : i32 to vector<10x24x1xi32>
    %33 = arith.cmpi sle, %28, %32 : vector<10x24x1xi32>
    %34 = arith.andi %31, %33 : vector<10x24x1xi1>
    %c1_i32_27 = arith.constant 1 : i32
    %35 = vector.broadcast %c1_i32_27 : i32 to vector<10x24x1xi32>
    %36 = arith.cmpi sge, %29, %35 : vector<10x24x1xi32>
    %37 = arith.andi %34, %36 : vector<10x24x1xi1>
    %c16_i32_28 = arith.constant 16 : i32
    %38 = vector.broadcast %c16_i32_28 : i32 to vector<10x24x1xi32>
    %39 = arith.cmpi sle, %29, %38 : vector<10x24x1xi32>
    %40 = arith.andi %37, %39 : vector<10x24x1xi1>
    %cst_29 = arith.constant 0.000000e+00 : f32
    %41 = vector.shape_cast %40 : vector<10x24x1xi1> to vector<10x24x1xi1>
    %42 = vector.broadcast %41 : vector<10x24x1xi1> to vector<10x24x8xi1>
    %43 = vector.broadcast %cst_29 : f32 to vector<10x24x8xf32>
    %44 = arith.select %42, %25, %43 : vector<10x24x8xi1>, vector<10x24x8xf32>
    %c0_30 = arith.constant 0 : index
    %c0_31 = arith.constant 0 : index
    %c0_32 = arith.constant 0 : index
    %45 = vector.load %arg16[%c0_30, %c0_31, %c0_32] : memref<10x24x8xf32, #tpu.memory_space<vmem>>, vector<10x24x8xf32>
    tpu.vector_store %arg16[%c0_30, %c0_31, %c0_32], %44 {strides = array<i32>} : memref<10x24x8xf32, #tpu.memory_space<vmem>>, vector<10x24x8xf32>,
    %cst_33 = arith.constant 0.000000e+00 : f32
    %46 = vector.broadcast %cst_33 : f32 to vector<8x16x8xf32>
    %c0_34 = arith.constant 0 : index
    %c0_35 = arith.constant 0 : index
    %c0_36 = arith.constant 0 : index
    %47 = vector.load %arg16[%c0_34, %c0_35, %c0_36] : memref<10x24x8xf32, #tpu.memory_space<vmem>>, vector<8x16x8xf32>
    %48 = vector.extract_strided_slice %3 {offsets = [0, 0], sizes = [1, 8], strides = [1, 1]} : vector<9x8xf32> to vector<1x8xf32>
    %49 = vector.shape_cast %48 : vector<1x8xf32> to vector<8xf32>
    %50 = vector.shape_cast %49 : vector<8xf32> to vector<1x1x8xf32>
    %51 = vector.broadcast %50 : vector<1x1x8xf32> to vector<8x16x8xf32>
    %52 = arith.mulf %47, %51 : vector<8x16x8xf32>
    %53 = arith.addf %46, %52 : vector<8x16x8xf32>
    %c0_37 = arith.constant 0 : index
    %c1 = arith.constant 1 : index
    %c0_38 = arith.constant 0 : index
    %54 = vector.load %arg16[%c0_37, %c1, %c0_38] : memref<10x24x8xf32, #tpu.memory_space<vmem>>, vector<8x16x8xf32>
    %55 = vector.extract_strided_slice %3 {offsets = [1, 0], sizes = [1, 8], strides = [1, 1]} : vector<9x8xf32> to vector<1x8xf32>
    %56 = vector.shape_cast %55 : vector<1x8xf32> to vector<8xf32>
    %57 = vector.shape_cast %56 : vector<8xf32> to vector<1x1x8xf32>
    %58 = vector.broadcast %57 : vector<1x1x8xf32> to vector<8x16x8xf32>
    %59 = arith.mulf %54, %58 : vector<8x16x8xf32>
    %60 = arith.addf %53, %59 : vector<8x16x8xf32>
    %c0_39 = arith.constant 0 : index
    %c2 = arith.constant 2 : index
    %c0_40 = arith.constant 0 : index
    %61 = vector.load %arg16[%c0_39, %c2, %c0_40] : memref<10x24x8xf32, #tpu.memory_space<vmem>>, vector<8x16x8xf32>
    %62 = vector.extract_strided_slice %3 {offsets = [2, 0], sizes = [1, 8], strides = [1, 1]} : vector<9x8xf32> to vector<1x8xf32>
    %63 = vector.shape_cast %62 : vector<1x8xf32> to vector<8xf32>
    %64 = vector.shape_cast %63 : vector<8xf32> to vector<1x1x8xf32>
    %65 = vector.broadcast %64 : vector<1x1x8xf32> to vector<8x16x8xf32>
    %66 = arith.mulf %61, %65 : vector<8x16x8xf32>
    %67 = arith.addf %60, %66 : vector<8x16x8xf32>
    %c1_41 = arith.constant 1 : index
    %c0_42 = arith.constant 0 : index
    %c0_43 = arith.constant 0 : index
    %68 = vector.load %arg16[%c1_41, %c0_42, %c0_43] : memref<10x24x8xf32, #tpu.memory_space<vmem>>, vector<8x16x8xf32>
    %69 = vector.extract_strided_slice %3 {offsets = [3, 0], sizes = [1, 8], strides = [1, 1]} : vector<9x8xf32> to vector<1x8xf32>
    %70 = vector.shape_cast %69 : vector<1x8xf32> to vector<8xf32>
    %71 = vector.shape_cast %70 : vector<8xf32> to vector<1x1x8xf32>
    %72 = vector.broadcast %71 : vector<1x1x8xf32> to vector<8x16x8xf32>
    %73 = arith.mulf %68, %72 : vector<8x16x8xf32>
    %74 = arith.addf %67, %73 : vector<8x16x8xf32>
    %c1_44 = arith.constant 1 : index
    %c1_45 = arith.constant 1 : index
    %c0_46 = arith.constant 0 : index
    %75 = vector.load %arg16[%c1_44, %c1_45, %c0_46] : memref<10x24x8xf32, #tpu.memory_space<vmem>>, vector<8x16x8xf32>
    %76 = vector.extract_strided_slice %3 {offsets = [4, 0], sizes = [1, 8], strides = [1, 1]} : vector<9x8xf32> to vector<1x8xf32>
    %77 = vector.shape_cast %76 : vector<1x8xf32> to vector<8xf32>
    %78 = vector.shape_cast %77 : vector<8xf32> to vector<1x1x8xf32>
    %79 = vector.broadcast %78 : vector<1x1x8xf32> to vector<8x16x8xf32>
    %80 = arith.mulf %75, %79 : vector<8x16x8xf32>
    %81 = arith.addf %74, %80 : vector<8x16x8xf32>
    %c1_47 = arith.constant 1 : index
    %c2_48 = arith.constant 2 : index
    %c0_49 = arith.constant 0 : index
    %82 = vector.load %arg16[%c1_47, %c2_48, %c0_49] : memref<10x24x8xf32, #tpu.memory_space<vmem>>, vector<8x16x8xf32>
    %83 = vector.extract_strided_slice %3 {offsets = [5, 0], sizes = [1, 8], strides = [1, 1]} : vector<9x8xf32> to vector<1x8xf32>
    %84 = vector.shape_cast %83 : vector<1x8xf32> to vector<8xf32>
    %85 = vector.shape_cast %84 : vector<8xf32> to vector<1x1x8xf32>
    %86 = vector.broadcast %85 : vector<1x1x8xf32> to vector<8x16x8xf32>
    %87 = arith.mulf %82, %86 : vector<8x16x8xf32>
    %88 = arith.addf %81, %87 : vector<8x16x8xf32>
    %c2_50 = arith.constant 2 : index
    %c0_51 = arith.constant 0 : index
    %c0_52 = arith.constant 0 : index
    %89 = vector.load %arg16[%c2_50, %c0_51, %c0_52] : memref<10x24x8xf32, #tpu.memory_space<vmem>>, vector<8x16x8xf32>
    %90 = vector.extract_strided_slice %3 {offsets = [6, 0], sizes = [1, 8], strides = [1, 1]} : vector<9x8xf32> to vector<1x8xf32>
    %91 = vector.shape_cast %90 : vector<1x8xf32> to vector<8xf32>
    %92 = vector.shape_cast %91 : vector<8xf32> to vector<1x1x8xf32>
    %93 = vector.broadcast %92 : vector<1x1x8xf32> to vector<8x16x8xf32>
    %94 = arith.mulf %89, %93 : vector<8x16x8xf32>
    %95 = arith.addf %88, %94 : vector<8x16x8xf32>
    %c2_53 = arith.constant 2 : index
    %c1_54 = arith.constant 1 : index
    %c0_55 = arith.constant 0 : index
    %96 = vector.load %arg16[%c2_53, %c1_54, %c0_55] : memref<10x24x8xf32, #tpu.memory_space<vmem>>, vector<8x16x8xf32>
    %97 = vector.extract_strided_slice %3 {offsets = [7, 0], sizes = [1, 8], strides = [1, 1]} : vector<9x8xf32> to vector<1x8xf32>
    %98 = vector.shape_cast %97 : vector<1x8xf32> to vector<8xf32>
    %99 = vector.shape_cast %98 : vector<8xf32> to vector<1x1x8xf32>
    %100 = vector.broadcast %99 : vector<1x1x8xf32> to vector<8x16x8xf32>
    %101 = arith.mulf %96, %100 : vector<8x16x8xf32>
    %102 = arith.addf %95, %101 : vector<8x16x8xf32>
    %c2_56 = arith.constant 2 : index
    %c2_57 = arith.constant 2 : index
    %c0_58 = arith.constant 0 : index
    %103 = vector.load %arg16[%c2_56, %c2_57, %c0_58] : memref<10x24x8xf32, #tpu.memory_space<vmem>>, vector<8x16x8xf32>
    %104 = vector.extract_strided_slice %3 {offsets = [8, 0], sizes = [1, 8], strides = [1, 1]} : vector<9x8xf32> to vector<1x8xf32>
    %105 = vector.shape_cast %104 : vector<1x8xf32> to vector<8xf32>
    %106 = vector.shape_cast %105 : vector<8xf32> to vector<1x1x8xf32>
    %107 = vector.broadcast %106 : vector<1x1x8xf32> to vector<8x16x8xf32>
    %108 = arith.mulf %103, %107 : vector<8x16x8xf32>
    %109 = arith.addf %102, %108 : vector<8x16x8xf32>
    %110 = vector.shape_cast %4 : vector<1x8xf32> to vector<1x1x8xf32>
    %111 = vector.broadcast %110 : vector<1x1x8xf32> to vector<8x16x8xf32>
    %112 = arith.mulf %109, %111 : vector<8x16x8xf32>
    %113 = vector.shape_cast %5 : vector<1x8xf32> to vector<1x1x8xf32>
    %114 = vector.broadcast %113 : vector<1x1x8xf32> to vector<8x16x8xf32>
    %115 = arith.addf %112, %114 : vector<8x16x8xf32>
    %cst_59 = arith.constant 0.000000e+00 : f32
    %116 = vector.broadcast %cst_59 : f32 to vector<8x16x8xf32>
    %117 = arith.maximumf %115, %116 : vector<8x16x8xf32>
    %118 = vector.shape_cast %117 : vector<8x16x8xf32> to vector<128x8xf32>
    %119 = arith.truncf %118 : vector<128x8xf32> to vector<128x8xbf16>
    %cst_60 = arith.constant dense<0.000000e+00> : vector<128x8xf32>
    %120 = tpu.matmul %119, %6, %cst_60 {dimension_numbers = #tpu.dot_dimension_numbers<[1], [0], [0], [1], [0, 0, 1, 1], [], []>} : vector<128x8xbf16>, vector<8x8xbf16>, vector<128x8xf32> -> vector<128x8xf32>
    %121 = vector.broadcast %7 : vector<1x8xf32> to vector<128x8xf32>
    %122 = arith.mulf %120, %121 : vector<128x8xf32>
    %123 = vector.broadcast %8 : vector<1x8xf32> to vector<128x8xf32>
    %124 = arith.addf %122, %123 : vector<128x8xf32>
    %c1_i32_61 = arith.constant 1 : i32
    %125 = arith.addi %12, %c1_i32_61 : i32
    %c0_62 = arith.constant 0 : index
    %126 = arith.index_cast %125 : i32 to index
    %c1_63 = arith.constant 1 : index
    %c0_64 = arith.constant 0 : index
    %127 = vector.load %arg2[%c0_62, %126, %c1_63, %c0_64] : memref<1x18x24x4xf32, #tpu.memory_space<vmem>>, vector<1x8x16x4xf32>
    %128 = vector.shape_cast %127 : vector<1x8x16x4xf32> to vector<8x16x4xf32>
    %129 = vector.shape_cast %128 : vector<8x16x4xf32> to vector<128x4xf32>
    %130 = arith.truncf %129 : vector<128x4xf32> to vector<128x4xbf16>
    %cst_65 = arith.constant dense<0.000000e+00> : vector<128x8xf32>
    %131 = tpu.matmul %130, %9, %cst_65 {dimension_numbers = #tpu.dot_dimension_numbers<[1], [0], [0], [1], [0, 0, 1, 1], [], []>} : vector<128x4xbf16>, vector<4x8xbf16>, vector<128x8xf32> -> vector<128x8xf32>
    %132 = vector.broadcast %10 : vector<1x8xf32> to vector<128x8xf32>
    %133 = arith.mulf %131, %132 : vector<128x8xf32>
    %134 = vector.broadcast %11 : vector<1x8xf32> to vector<128x8xf32>
    %135 = arith.addf %133, %134 : vector<128x8xf32>
    %136 = arith.addf %124, %135 : vector<128x8xf32>
    %137 = vector.shape_cast %136 : vector<128x8xf32> to vector<1x8x128xf32>
    %c0_66 = arith.constant 0 : index
    %c0_67 = arith.constant 0 : index
    %c0_68 = arith.constant 0 : index
    %138 = vector.load %arg15[%c0_66, %c0_67, %c0_68] : memref<1x8x128xf32, #tpu.memory_space<vmem>>, vector<1x8x128xf32>
    tpu.vector_store %arg15[%c0_66, %c0_67, %c0_68], %137 {strides = array<i32>} : memref<1x8x128xf32, #tpu.memory_space<vmem>>, vector<1x8x128xf32>,
    return
  }
  func.func @transform_0(%arg0: i32, %arg1: i32) -> (i32, i32, i32, i32) {
    %c0_i32 = arith.constant 0 : i32
    %c0_i32_0 = arith.constant 0 : i32
    %c0_i32_1 = arith.constant 0 : i32
    %c0_i32_2 = arith.constant 0 : i32
    return %arg0, %c0_i32, %c0_i32_0, %c0_i32_1 : i32, i32, i32, i32
  }
  func.func @transform_1(%arg0: i32, %arg1: i32) -> (i32, i32) {
    %c0_i32 = arith.constant 0 : i32
    %c0_i32_0 = arith.constant 0 : i32
    %c0_i32_1 = arith.constant 0 : i32
    return %c0_i32, %c0_i32_0 : i32, i32
  }
  func.func @transform_2(%arg0: i32, %arg1: i32) -> (i32, i32) {
    %c0_i32 = arith.constant 0 : i32
    %c0_i32_0 = arith.constant 0 : i32
    %c0_i32_1 = arith.constant 0 : i32
    return %c0_i32, %c0_i32_0 : i32, i32
  }
  func.func @transform_3(%arg0: i32, %arg1: i32) -> (i32, i32) {
    %c0_i32 = arith.constant 0 : i32
    %c0_i32_0 = arith.constant 0 : i32
    %c0_i32_1 = arith.constant 0 : i32
    return %c0_i32, %c0_i32_0 : i32, i32
  }
  func.func @transform_4(%arg0: i32, %arg1: i32) -> (i32, i32) {
    %c0_i32 = arith.constant 0 : i32
    %c0_i32_0 = arith.constant 0 : i32
    %c0_i32_1 = arith.constant 0 : i32
    return %c0_i32, %c0_i32_0 : i32, i32
  }
  func.func @transform_5(%arg0: i32, %arg1: i32) -> (i32, i32) {
    %c0_i32 = arith.constant 0 : i32
    %c0_i32_0 = arith.constant 0 : i32
    %c0_i32_1 = arith.constant 0 : i32
    return %c0_i32, %c0_i32_0 : i32, i32
  }
  func.func @transform_6(%arg0: i32, %arg1: i32) -> (i32, i32) {
    %c0_i32 = arith.constant 0 : i32
    %c0_i32_0 = arith.constant 0 : i32
    %c0_i32_1 = arith.constant 0 : i32
    return %c0_i32, %c0_i32_0 : i32, i32
  }
  func.func @transform_7(%arg0: i32, %arg1: i32) -> (i32, i32) {
    %c0_i32 = arith.constant 0 : i32
    %c0_i32_0 = arith.constant 0 : i32
    %c0_i32_1 = arith.constant 0 : i32
    return %c0_i32, %c0_i32_0 : i32, i32
  }
  func.func @transform_8(%arg0: i32, %arg1: i32) -> (i32, i32) {
    %c0_i32 = arith.constant 0 : i32
    %c0_i32_0 = arith.constant 0 : i32
    %c0_i32_1 = arith.constant 0 : i32
    return %c0_i32, %c0_i32_0 : i32, i32
  }
  func.func @transform_9(%arg0: i32, %arg1: i32) -> (i32, i32) {
    %c0_i32 = arith.constant 0 : i32
    %c0_i32_0 = arith.constant 0 : i32
    %c0_i32_1 = arith.constant 0 : i32
    return %c0_i32, %c0_i32_0 : i32, i32
  }
  func.func @transform_10(%arg0: i32, %arg1: i32) -> (i32, i32) {
    %c0_i32 = arith.constant 0 : i32
    %c0_i32_0 = arith.constant 0 : i32
    %c0_i32_1 = arith.constant 0 : i32
    return %c0_i32, %c0_i32_0 : i32, i32
  }
  func.func @transform_11(%arg0: i32, %arg1: i32) -> (i32, i32) {
    %c0_i32 = arith.constant 0 : i32
    %c0_i32_0 = arith.constant 0 : i32
    %c0_i32_1 = arith.constant 0 : i32
    return %c0_i32, %c0_i32_0 : i32, i32
  }
  func.func @transform_12(%arg0: i32, %arg1: i32) -> (i32, i32) {
    %c0_i32 = arith.constant 0 : i32
    %c0_i32_0 = arith.constant 0 : i32
    %c0_i32_1 = arith.constant 0 : i32
    return %c0_i32, %c0_i32_0 : i32, i32
  }
  func.func @transform_13(%arg0: i32, %arg1: i32) -> (i32, i32, i32) {
    %c0_i32 = arith.constant 0 : i32
    %c0_i32_0 = arith.constant 0 : i32
    return %arg0, %arg1, %c0_i32 : i32, i32, i32
  }
}

module attributes {stable_mosaic.version = 11 : i64} {
  func.func @kernel(%arg0: i32, %arg1: i32, %arg2: memref<1x18x24x4xf32, #tpu.memory_space<vmem>>, %arg3: memref<4x8xbf16, #tpu.memory_space<vmem>>, %arg4: memref<1x8xf32, #tpu.memory_space<vmem>>, %arg5: memref<1x8xf32, #tpu.memory_space<vmem>>, %arg6: memref<9x8xf32, #tpu.memory_space<vmem>>, %arg7: memref<1x8xf32, #tpu.memory_space<vmem>>, %arg8: memref<1x8xf32, #tpu.memory_space<vmem>>, %arg9: memref<8x8xbf16, #tpu.memory_space<vmem>>, %arg10: memref<1x8xf32, #tpu.memory_space<vmem>>, %arg11: memref<1x8xf32, #tpu.memory_space<vmem>>, %arg12: memref<4x8xbf16, #tpu.memory_space<vmem>>, %arg13: memref<1x8xf32, #tpu.memory_space<vmem>>, %arg14: memref<1x8xf32, #tpu.memory_space<vmem>>, %arg15: memref<1x8x16x8xf32, #tpu.memory_space<vmem>>, %arg16: memref<10x24x8xf32, #tpu.memory_space<vmem>>) attributes {dimension_semantics = [#tpu.dimension_semantics<parallel>, #tpu.dimension_semantics<parallel>], iteration_bounds = array<i64: 2, 2>, scalar_prefetch = 0 : i64, scratch_operands = 1 : i64, tpu.core_type = #tpu.core_type<tc>, window_params = [{transform_indices = @transform_0, window_bounds = array<i64: 1, 18, 24, 4>}, {pipeline_mode = #tpu.pipeline_mode<synchronous>, transform_indices = @transform_1, window_bounds = array<i64: 4, 8>}, {pipeline_mode = #tpu.pipeline_mode<synchronous>, transform_indices = @transform_2, window_bounds = array<i64: 1, 8>}, {pipeline_mode = #tpu.pipeline_mode<synchronous>, transform_indices = @transform_3, window_bounds = array<i64: 1, 8>}, {pipeline_mode = #tpu.pipeline_mode<synchronous>, transform_indices = @transform_4, window_bounds = array<i64: 9, 8>}, {pipeline_mode = #tpu.pipeline_mode<synchronous>, transform_indices = @transform_5, window_bounds = array<i64: 1, 8>}, {pipeline_mode = #tpu.pipeline_mode<synchronous>, transform_indices = @transform_6, window_bounds = array<i64: 1, 8>}, {pipeline_mode = #tpu.pipeline_mode<synchronous>, transform_indices = @transform_7, window_bounds = array<i64: 8, 8>}, {pipeline_mode = #tpu.pipeline_mode<synchronous>, transform_indices = @transform_8, window_bounds = array<i64: 1, 8>}, {pipeline_mode = #tpu.pipeline_mode<synchronous>, transform_indices = @transform_9, window_bounds = array<i64: 1, 8>}, {pipeline_mode = #tpu.pipeline_mode<synchronous>, transform_indices = @transform_10, window_bounds = array<i64: 4, 8>}, {pipeline_mode = #tpu.pipeline_mode<synchronous>, transform_indices = @transform_11, window_bounds = array<i64: 1, 8>}, {pipeline_mode = #tpu.pipeline_mode<synchronous>, transform_indices = @transform_12, window_bounds = array<i64: 1, 8>}, {transform_indices = @transform_13, window_bounds = array<i64: 1, 8, 16, 8>}]} {
    %c0 = arith.constant 0 : index
    %c0_0 = arith.constant 0 : index
    %0 = vector.load %arg3[%c0, %c0_0] : memref<4x8xbf16, #tpu.memory_space<vmem>>, vector<4x8xbf16>
    %c0_1 = arith.constant 0 : index
    %c0_2 = arith.constant 0 : index
    %1 = vector.load %arg4[%c0_1, %c0_2] : memref<1x8xf32, #tpu.memory_space<vmem>>, vector<1x8xf32>
    %c0_3 = arith.constant 0 : index
    %c0_4 = arith.constant 0 : index
    %2 = vector.load %arg5[%c0_3, %c0_4] : memref<1x8xf32, #tpu.memory_space<vmem>>, vector<1x8xf32>
    %c0_5 = arith.constant 0 : index
    %c0_6 = arith.constant 0 : index
    %3 = vector.load %arg6[%c0_5, %c0_6] : memref<9x8xf32, #tpu.memory_space<vmem>>, vector<9x8xf32>
    %c0_7 = arith.constant 0 : index
    %c0_8 = arith.constant 0 : index
    %4 = vector.load %arg7[%c0_7, %c0_8] : memref<1x8xf32, #tpu.memory_space<vmem>>, vector<1x8xf32>
    %c0_9 = arith.constant 0 : index
    %c0_10 = arith.constant 0 : index
    %5 = vector.load %arg8[%c0_9, %c0_10] : memref<1x8xf32, #tpu.memory_space<vmem>>, vector<1x8xf32>
    %c0_11 = arith.constant 0 : index
    %c0_12 = arith.constant 0 : index
    %6 = vector.load %arg9[%c0_11, %c0_12] : memref<8x8xbf16, #tpu.memory_space<vmem>>, vector<8x8xbf16>
    %c0_13 = arith.constant 0 : index
    %c0_14 = arith.constant 0 : index
    %7 = vector.load %arg10[%c0_13, %c0_14] : memref<1x8xf32, #tpu.memory_space<vmem>>, vector<1x8xf32>
    %c0_15 = arith.constant 0 : index
    %c0_16 = arith.constant 0 : index
    %8 = vector.load %arg11[%c0_15, %c0_16] : memref<1x8xf32, #tpu.memory_space<vmem>>, vector<1x8xf32>
    %c0_17 = arith.constant 0 : index
    %c0_18 = arith.constant 0 : index
    %9 = vector.load %arg12[%c0_17, %c0_18] : memref<4x8xbf16, #tpu.memory_space<vmem>>, vector<4x8xbf16>
    %c0_19 = arith.constant 0 : index
    %c0_20 = arith.constant 0 : index
    %10 = vector.load %arg13[%c0_19, %c0_20] : memref<1x8xf32, #tpu.memory_space<vmem>>, vector<1x8xf32>
    %c0_21 = arith.constant 0 : index
    %c0_22 = arith.constant 0 : index
    %11 = vector.load %arg14[%c0_21, %c0_22] : memref<1x8xf32, #tpu.memory_space<vmem>>, vector<1x8xf32>
    %c8_i32 = arith.constant 8 : i32
    %12 = arith.muli %arg1, %c8_i32 : i32
    %c0_23 = arith.constant 0 : index
    %13 = arith.index_cast %12 : i32 to index
    %c0_24 = arith.constant 0 : index
    %c0_25 = arith.constant 0 : index
    %14 = vector.load %arg2[%c0_23, %13, %c0_24, %c0_25] : memref<1x18x24x4xf32, #tpu.memory_space<vmem>>, vector<1x10x24x4xf32>
    %15 = vector.shape_cast %14 : vector<1x10x24x4xf32> to vector<10x24x4xf32>
    %16 = vector.shape_cast %15 : vector<10x24x4xf32> to vector<240x4xf32>
    %17 = arith.truncf %16 : vector<240x4xf32> to vector<240x4xbf16>
    %cst = arith.constant dense<0.000000e+00> : vector<240x8xf32>
    %18 = tpu.matmul %17, %0, %cst {dimension_numbers = #tpu.dot_dimension_numbers<[1], [0], [0], [1], [0, 0, 1, 1], [], []>} : vector<240x4xbf16>, vector<4x8xbf16>, vector<240x8xf32> -> vector<240x8xf32>
    %19 = vector.broadcast %1 : vector<1x8xf32> to vector<240x8xf32>
    %20 = arith.mulf %18, %19 : vector<240x8xf32>
    %21 = vector.broadcast %2 : vector<1x8xf32> to vector<240x8xf32>
    %22 = arith.addf %20, %21 : vector<240x8xf32>
    %cst_26 = arith.constant 0.000000e+00 : f32
    %23 = vector.broadcast %cst_26 : f32 to vector<240x8xf32>
    %24 = arith.maximumf %22, %23 : vector<240x8xf32>
    %25 = vector.shape_cast %24 : vector<240x8xf32> to vector<10x24x8xf32>
    %26 = tpu.iota {dimensions = array<i32: 0>} : vector<10x24x1xi32>
    %27 = vector.broadcast %12 : i32 to vector<10x24x1xi32>
    %28 = arith.addi %27, %26 : vector<10x24x1xi32>
    %29 = tpu.iota {dimensions = array<i32: 1>} : vector<10x24x1xi32>
    %c1_i32 = arith.constant 1 : i32
    %30 = vector.broadcast %c1_i32 : i32 to vector<10x24x1xi32>
    %31 = arith.cmpi sge, %28, %30 : vector<10x24x1xi32>
    %c16_i32 = arith.constant 16 : i32
    %32 = vector.broadcast %c16_i32 : i32 to vector<10x24x1xi32>
    %33 = arith.cmpi sle, %28, %32 : vector<10x24x1xi32>
    %34 = arith.andi %31, %33 : vector<10x24x1xi1>
    %c1_i32_27 = arith.constant 1 : i32
    %35 = vector.broadcast %c1_i32_27 : i32 to vector<10x24x1xi32>
    %36 = arith.cmpi sge, %29, %35 : vector<10x24x1xi32>
    %37 = arith.andi %34, %36 : vector<10x24x1xi1>
    %c16_i32_28 = arith.constant 16 : i32
    %38 = vector.broadcast %c16_i32_28 : i32 to vector<10x24x1xi32>
    %39 = arith.cmpi sle, %29, %38 : vector<10x24x1xi32>
    %40 = arith.andi %37, %39 : vector<10x24x1xi1>
    %cst_29 = arith.constant 0.000000e+00 : f32
    %41 = vector.shape_cast %40 : vector<10x24x1xi1> to vector<10x24x1xi1>
    %42 = vector.broadcast %41 : vector<10x24x1xi1> to vector<10x24x8xi1>
    %43 = vector.broadcast %cst_29 : f32 to vector<10x24x8xf32>
    %44 = arith.select %42, %25, %43 : vector<10x24x8xi1>, vector<10x24x8xf32>
    %c0_30 = arith.constant 0 : index
    %c0_31 = arith.constant 0 : index
    %c0_32 = arith.constant 0 : index
    %45 = vector.load %arg16[%c0_30, %c0_31, %c0_32] : memref<10x24x8xf32, #tpu.memory_space<vmem>>, vector<10x24x8xf32>
    tpu.vector_store %arg16[%c0_30, %c0_31, %c0_32], %44 {strides = array<i32>} : memref<10x24x8xf32, #tpu.memory_space<vmem>>, vector<10x24x8xf32>,
    %cst_33 = arith.constant 0.000000e+00 : f32
    %46 = vector.broadcast %cst_33 : f32 to vector<8x16x8xf32>
    %c0_34 = arith.constant 0 : index
    %c0_35 = arith.constant 0 : index
    %c0_36 = arith.constant 0 : index
    %47 = vector.load %arg16[%c0_34, %c0_35, %c0_36] : memref<10x24x8xf32, #tpu.memory_space<vmem>>, vector<8x16x8xf32>
    %48 = vector.extract_strided_slice %3 {offsets = [0, 0], sizes = [1, 8], strides = [1, 1]} : vector<9x8xf32> to vector<1x8xf32>
    %49 = vector.shape_cast %48 : vector<1x8xf32> to vector<8xf32>
    %50 = vector.shape_cast %49 : vector<8xf32> to vector<1x1x8xf32>
    %51 = vector.broadcast %50 : vector<1x1x8xf32> to vector<8x16x8xf32>
    %52 = arith.mulf %47, %51 : vector<8x16x8xf32>
    %53 = arith.addf %46, %52 : vector<8x16x8xf32>
    %c0_37 = arith.constant 0 : index
    %c1 = arith.constant 1 : index
    %c0_38 = arith.constant 0 : index
    %54 = vector.load %arg16[%c0_37, %c1, %c0_38] : memref<10x24x8xf32, #tpu.memory_space<vmem>>, vector<8x16x8xf32>
    %55 = vector.extract_strided_slice %3 {offsets = [1, 0], sizes = [1, 8], strides = [1, 1]} : vector<9x8xf32> to vector<1x8xf32>
    %56 = vector.shape_cast %55 : vector<1x8xf32> to vector<8xf32>
    %57 = vector.shape_cast %56 : vector<8xf32> to vector<1x1x8xf32>
    %58 = vector.broadcast %57 : vector<1x1x8xf32> to vector<8x16x8xf32>
    %59 = arith.mulf %54, %58 : vector<8x16x8xf32>
    %60 = arith.addf %53, %59 : vector<8x16x8xf32>
    %c0_39 = arith.constant 0 : index
    %c2 = arith.constant 2 : index
    %c0_40 = arith.constant 0 : index
    %61 = vector.load %arg16[%c0_39, %c2, %c0_40] : memref<10x24x8xf32, #tpu.memory_space<vmem>>, vector<8x16x8xf32>
    %62 = vector.extract_strided_slice %3 {offsets = [2, 0], sizes = [1, 8], strides = [1, 1]} : vector<9x8xf32> to vector<1x8xf32>
    %63 = vector.shape_cast %62 : vector<1x8xf32> to vector<8xf32>
    %64 = vector.shape_cast %63 : vector<8xf32> to vector<1x1x8xf32>
    %65 = vector.broadcast %64 : vector<1x1x8xf32> to vector<8x16x8xf32>
    %66 = arith.mulf %61, %65 : vector<8x16x8xf32>
    %67 = arith.addf %60, %66 : vector<8x16x8xf32>
    %c1_41 = arith.constant 1 : index
    %c0_42 = arith.constant 0 : index
    %c0_43 = arith.constant 0 : index
    %68 = vector.load %arg16[%c1_41, %c0_42, %c0_43] : memref<10x24x8xf32, #tpu.memory_space<vmem>>, vector<8x16x8xf32>
    %69 = vector.extract_strided_slice %3 {offsets = [3, 0], sizes = [1, 8], strides = [1, 1]} : vector<9x8xf32> to vector<1x8xf32>
    %70 = vector.shape_cast %69 : vector<1x8xf32> to vector<8xf32>
    %71 = vector.shape_cast %70 : vector<8xf32> to vector<1x1x8xf32>
    %72 = vector.broadcast %71 : vector<1x1x8xf32> to vector<8x16x8xf32>
    %73 = arith.mulf %68, %72 : vector<8x16x8xf32>
    %74 = arith.addf %67, %73 : vector<8x16x8xf32>
    %c1_44 = arith.constant 1 : index
    %c1_45 = arith.constant 1 : index
    %c0_46 = arith.constant 0 : index
    %75 = vector.load %arg16[%c1_44, %c1_45, %c0_46] : memref<10x24x8xf32, #tpu.memory_space<vmem>>, vector<8x16x8xf32>
    %76 = vector.extract_strided_slice %3 {offsets = [4, 0], sizes = [1, 8], strides = [1, 1]} : vector<9x8xf32> to vector<1x8xf32>
    %77 = vector.shape_cast %76 : vector<1x8xf32> to vector<8xf32>
    %78 = vector.shape_cast %77 : vector<8xf32> to vector<1x1x8xf32>
    %79 = vector.broadcast %78 : vector<1x1x8xf32> to vector<8x16x8xf32>
    %80 = arith.mulf %75, %79 : vector<8x16x8xf32>
    %81 = arith.addf %74, %80 : vector<8x16x8xf32>
    %c1_47 = arith.constant 1 : index
    %c2_48 = arith.constant 2 : index
    %c0_49 = arith.constant 0 : index
    %82 = vector.load %arg16[%c1_47, %c2_48, %c0_49] : memref<10x24x8xf32, #tpu.memory_space<vmem>>, vector<8x16x8xf32>
    %83 = vector.extract_strided_slice %3 {offsets = [5, 0], sizes = [1, 8], strides = [1, 1]} : vector<9x8xf32> to vector<1x8xf32>
    %84 = vector.shape_cast %83 : vector<1x8xf32> to vector<8xf32>
    %85 = vector.shape_cast %84 : vector<8xf32> to vector<1x1x8xf32>
    %86 = vector.broadcast %85 : vector<1x1x8xf32> to vector<8x16x8xf32>
    %87 = arith.mulf %82, %86 : vector<8x16x8xf32>
    %88 = arith.addf %81, %87 : vector<8x16x8xf32>
    %c2_50 = arith.constant 2 : index
    %c0_51 = arith.constant 0 : index
    %c0_52 = arith.constant 0 : index
    %89 = vector.load %arg16[%c2_50, %c0_51, %c0_52] : memref<10x24x8xf32, #tpu.memory_space<vmem>>, vector<8x16x8xf32>
    %90 = vector.extract_strided_slice %3 {offsets = [6, 0], sizes = [1, 8], strides = [1, 1]} : vector<9x8xf32> to vector<1x8xf32>
    %91 = vector.shape_cast %90 : vector<1x8xf32> to vector<8xf32>
    %92 = vector.shape_cast %91 : vector<8xf32> to vector<1x1x8xf32>
    %93 = vector.broadcast %92 : vector<1x1x8xf32> to vector<8x16x8xf32>
    %94 = arith.mulf %89, %93 : vector<8x16x8xf32>
    %95 = arith.addf %88, %94 : vector<8x16x8xf32>
    %c2_53 = arith.constant 2 : index
    %c1_54 = arith.constant 1 : index
    %c0_55 = arith.constant 0 : index
    %96 = vector.load %arg16[%c2_53, %c1_54, %c0_55] : memref<10x24x8xf32, #tpu.memory_space<vmem>>, vector<8x16x8xf32>
    %97 = vector.extract_strided_slice %3 {offsets = [7, 0], sizes = [1, 8], strides = [1, 1]} : vector<9x8xf32> to vector<1x8xf32>
    %98 = vector.shape_cast %97 : vector<1x8xf32> to vector<8xf32>
    %99 = vector.shape_cast %98 : vector<8xf32> to vector<1x1x8xf32>
    %100 = vector.broadcast %99 : vector<1x1x8xf32> to vector<8x16x8xf32>
    %101 = arith.mulf %96, %100 : vector<8x16x8xf32>
    %102 = arith.addf %95, %101 : vector<8x16x8xf32>
    %c2_56 = arith.constant 2 : index
    %c2_57 = arith.constant 2 : index
    %c0_58 = arith.constant 0 : index
    %103 = vector.load %arg16[%c2_56, %c2_57, %c0_58] : memref<10x24x8xf32, #tpu.memory_space<vmem>>, vector<8x16x8xf32>
    %104 = vector.extract_strided_slice %3 {offsets = [8, 0], sizes = [1, 8], strides = [1, 1]} : vector<9x8xf32> to vector<1x8xf32>
    %105 = vector.shape_cast %104 : vector<1x8xf32> to vector<8xf32>
    %106 = vector.shape_cast %105 : vector<8xf32> to vector<1x1x8xf32>
    %107 = vector.broadcast %106 : vector<1x1x8xf32> to vector<8x16x8xf32>
    %108 = arith.mulf %103, %107 : vector<8x16x8xf32>
    %109 = arith.addf %102, %108 : vector<8x16x8xf32>
    %110 = vector.shape_cast %4 : vector<1x8xf32> to vector<1x1x8xf32>
    %111 = vector.broadcast %110 : vector<1x1x8xf32> to vector<8x16x8xf32>
    %112 = arith.mulf %109, %111 : vector<8x16x8xf32>
    %113 = vector.shape_cast %5 : vector<1x8xf32> to vector<1x1x8xf32>
    %114 = vector.broadcast %113 : vector<1x1x8xf32> to vector<8x16x8xf32>
    %115 = arith.addf %112, %114 : vector<8x16x8xf32>
    %cst_59 = arith.constant 0.000000e+00 : f32
    %116 = vector.broadcast %cst_59 : f32 to vector<8x16x8xf32>
    %117 = arith.maximumf %115, %116 : vector<8x16x8xf32>
    %118 = vector.shape_cast %117 : vector<8x16x8xf32> to vector<128x8xf32>
    %119 = arith.truncf %118 : vector<128x8xf32> to vector<128x8xbf16>
    %cst_60 = arith.constant dense<0.000000e+00> : vector<128x8xf32>
    %120 = tpu.matmul %119, %6, %cst_60 {dimension_numbers = #tpu.dot_dimension_numbers<[1], [0], [0], [1], [0, 0, 1, 1], [], []>} : vector<128x8xbf16>, vector<8x8xbf16>, vector<128x8xf32> -> vector<128x8xf32>
    %121 = vector.broadcast %7 : vector<1x8xf32> to vector<128x8xf32>
    %122 = arith.mulf %120, %121 : vector<128x8xf32>
    %123 = vector.broadcast %8 : vector<1x8xf32> to vector<128x8xf32>
    %124 = arith.addf %122, %123 : vector<128x8xf32>
    %c1_i32_61 = arith.constant 1 : i32
    %125 = arith.addi %12, %c1_i32_61 : i32
    %c0_62 = arith.constant 0 : index
    %126 = arith.index_cast %125 : i32 to index
    %c1_63 = arith.constant 1 : index
    %c0_64 = arith.constant 0 : index
    %127 = vector.load %arg2[%c0_62, %126, %c1_63, %c0_64] : memref<1x18x24x4xf32, #tpu.memory_space<vmem>>, vector<1x8x16x4xf32>
    %128 = vector.shape_cast %127 : vector<1x8x16x4xf32> to vector<8x16x4xf32>
    %129 = vector.shape_cast %128 : vector<8x16x4xf32> to vector<128x4xf32>
    %130 = arith.truncf %129 : vector<128x4xf32> to vector<128x4xbf16>
    %cst_65 = arith.constant dense<0.000000e+00> : vector<128x8xf32>
    %131 = tpu.matmul %130, %9, %cst_65 {dimension_numbers = #tpu.dot_dimension_numbers<[1], [0], [0], [1], [0, 0, 1, 1], [], []>} : vector<128x4xbf16>, vector<4x8xbf16>, vector<128x8xf32> -> vector<128x8xf32>
    %132 = vector.broadcast %10 : vector<1x8xf32> to vector<128x8xf32>
    %133 = arith.mulf %131, %132 : vector<128x8xf32>
    %134 = vector.broadcast %11 : vector<1x8xf32> to vector<128x8xf32>
    %135 = arith.addf %133, %134 : vector<128x8xf32>
    %136 = arith.addf %124, %135 : vector<128x8xf32>
    %137 = vector.shape_cast %136 : vector<128x8xf32> to vector<1x8x16x8xf32>
    %c0_66 = arith.constant 0 : index
    %c0_67 = arith.constant 0 : index
    %c0_68 = arith.constant 0 : index
    %c0_69 = arith.constant 0 : index
    %138 = vector.load %arg15[%c0_66, %c0_67, %c0_68, %c0_69] : memref<1x8x16x8xf32, #tpu.memory_space<vmem>>, vector<1x8x16x8xf32>
    tpu.vector_store %arg15[%c0_66, %c0_67, %c0_68, %c0_69], %137 {strides = array<i32>} : memref<1x8x16x8xf32, #tpu.memory_space<vmem>>, vector<1x8x16x8xf32>,
    return
  }
  func.func @transform_0(%arg0: i32, %arg1: i32) -> (i32, i32, i32, i32) {
    %c0_i32 = arith.constant 0 : i32
    %c0_i32_0 = arith.constant 0 : i32
    %c0_i32_1 = arith.constant 0 : i32
    %c0_i32_2 = arith.constant 0 : i32
    return %arg0, %c0_i32, %c0_i32_0, %c0_i32_1 : i32, i32, i32, i32
  }
  func.func @transform_1(%arg0: i32, %arg1: i32) -> (i32, i32) {
    %c0_i32 = arith.constant 0 : i32
    %c0_i32_0 = arith.constant 0 : i32
    %c0_i32_1 = arith.constant 0 : i32
    return %c0_i32, %c0_i32_0 : i32, i32
  }
  func.func @transform_2(%arg0: i32, %arg1: i32) -> (i32, i32) {
    %c0_i32 = arith.constant 0 : i32
    %c0_i32_0 = arith.constant 0 : i32
    %c0_i32_1 = arith.constant 0 : i32
    return %c0_i32, %c0_i32_0 : i32, i32
  }
  func.func @transform_3(%arg0: i32, %arg1: i32) -> (i32, i32) {
    %c0_i32 = arith.constant 0 : i32
    %c0_i32_0 = arith.constant 0 : i32
    %c0_i32_1 = arith.constant 0 : i32
    return %c0_i32, %c0_i32_0 : i32, i32
  }
  func.func @transform_4(%arg0: i32, %arg1: i32) -> (i32, i32) {
    %c0_i32 = arith.constant 0 : i32
    %c0_i32_0 = arith.constant 0 : i32
    %c0_i32_1 = arith.constant 0 : i32
    return %c0_i32, %c0_i32_0 : i32, i32
  }
  func.func @transform_5(%arg0: i32, %arg1: i32) -> (i32, i32) {
    %c0_i32 = arith.constant 0 : i32
    %c0_i32_0 = arith.constant 0 : i32
    %c0_i32_1 = arith.constant 0 : i32
    return %c0_i32, %c0_i32_0 : i32, i32
  }
  func.func @transform_6(%arg0: i32, %arg1: i32) -> (i32, i32) {
    %c0_i32 = arith.constant 0 : i32
    %c0_i32_0 = arith.constant 0 : i32
    %c0_i32_1 = arith.constant 0 : i32
    return %c0_i32, %c0_i32_0 : i32, i32
  }
  func.func @transform_7(%arg0: i32, %arg1: i32) -> (i32, i32) {
    %c0_i32 = arith.constant 0 : i32
    %c0_i32_0 = arith.constant 0 : i32
    %c0_i32_1 = arith.constant 0 : i32
    return %c0_i32, %c0_i32_0 : i32, i32
  }
  func.func @transform_8(%arg0: i32, %arg1: i32) -> (i32, i32) {
    %c0_i32 = arith.constant 0 : i32
    %c0_i32_0 = arith.constant 0 : i32
    %c0_i32_1 = arith.constant 0 : i32
    return %c0_i32, %c0_i32_0 : i32, i32
  }
  func.func @transform_9(%arg0: i32, %arg1: i32) -> (i32, i32) {
    %c0_i32 = arith.constant 0 : i32
    %c0_i32_0 = arith.constant 0 : i32
    %c0_i32_1 = arith.constant 0 : i32
    return %c0_i32, %c0_i32_0 : i32, i32
  }
  func.func @transform_10(%arg0: i32, %arg1: i32) -> (i32, i32) {
    %c0_i32 = arith.constant 0 : i32
    %c0_i32_0 = arith.constant 0 : i32
    %c0_i32_1 = arith.constant 0 : i32
    return %c0_i32, %c0_i32_0 : i32, i32
  }
  func.func @transform_11(%arg0: i32, %arg1: i32) -> (i32, i32) {
    %c0_i32 = arith.constant 0 : i32
    %c0_i32_0 = arith.constant 0 : i32
    %c0_i32_1 = arith.constant 0 : i32
    return %c0_i32, %c0_i32_0 : i32, i32
  }
  func.func @transform_12(%arg0: i32, %arg1: i32) -> (i32, i32) {
    %c0_i32 = arith.constant 0 : i32
    %c0_i32_0 = arith.constant 0 : i32
    %c0_i32_1 = arith.constant 0 : i32
    return %c0_i32, %c0_i32_0 : i32, i32
  }
  func.func @transform_13(%arg0: i32, %arg1: i32) -> (i32, i32, i32, i32) {
    %c0_i32 = arith.constant 0 : i32
    %c0_i32_0 = arith.constant 0 : i32
    %c0_i32_1 = arith.constant 0 : i32
    return %arg0, %arg1, %c0_i32, %c0_i32_0 : i32, i32, i32, i32
  }
}

</mosaic_0001>

<bundles_post_ra>
// kernel: _block_nchw.1
= control target key start
LH: loop header
LB: loop body
LE: loop exit
PB: predicated region body
PF: predicated region fallthrough
CT: control target
= control target key end

     0   :  { %s2459_s25 = smov 0   ;;  %s2461_s26 = smov 0   ;;  %s3529_s0 = inlined_call_operand.vmem [shape: f32[2,18,24,4], index: 0, kind: input, shape index: {}]   ;;  %s3530_s1 = inlined_call_operand.vmem [shape: bf16[4,8], index: 1, kind: input, shape index: {}]   ;;  %s3531_s2 = inlined_call_operand.vmem [shape: f32[1,8], index: 2, kind: input, shape index: {}]   ;;  %s3532_s3 = inlined_call_operand.vmem [shape: f32[1,8], index: 3, kind: input, shape index: {}]   ;;  %s3533_s4 = inlined_call_operand.vmem [shape: f32[9,8], index: 4, kind: input, shape index: {}]   ;;  %s3534_s5 = inlined_call_operand.vmem [shape: f32[1,8], index: 5, kind: input, shape index: {}]   ;;  %s3535_s6 = inlined_call_operand.vmem [shape: f32[1,8], index: 6, kind: input, shape index: {}]   ;;  %s3536_s7 = inlined_call_operand.vmem [shape: bf16[8,8], index: 7, kind: input, shape index: {}]   ;;  %s3537_s8 = inlined_call_operand.vmem [shape: f32[1,8], index: 8, kind: input, shape index: {}]   ;;  %s3538_s9 = inlined_call_operand.vmem [shape: f32[1,8], index: 9, kind: input, shape index: {}]   ;;  %s3539_s10 = inlined_call_operand.vmem [shape: bf16[4,8], index: 10, kind: input, shape index: {}]   ;;  %s3540_s11 = inlined_call_operand.vmem [shape: f32[1,8], index: 11, kind: input, shape index: {}]   ;;  %s3541_s12 = inlined_call_operand.vmem [shape: f32[1,8], index: 12, kind: input, shape index: {}]   ;;  %s3542_s13 = inlined_call_operand.vmem [shape: f32[2,16,16,8], index: 13, kind: output, shape index: {}]  }
   0x1   :  { %s2463_s27 = smov 0   ;;  %s2465_s28 = smov 0  }
   0x2   :  { %s2467_s29 = smov 0  }
   0x3 LB: > { %s32_s30 = sadd.s32 1, %s2377_s27  ;;  %s35_s14 = sadd.s32 1, %s2381_s28  ;;  %s2385_s29 = sphi %s2467_s29, %s23_s29   ;;  %s2381_s28 = sphi %s2465_s28, %s3592_s28   ;;  %s2377_s27 = sphi %s2463_s27, %s3591_s27   ;;  %s2373_s26 = sphi %s2461_s26, %s3590_s26   ;;  %s2369_s25 = sphi %s2459_s25, %s3589_s25  }
   0x4   : > { %p33_p0 = scmp.ge.s32.totalorder %s32_s30, 2  ;;  %p2098_p1 = scmp.ge.s32.totalorder %s2385_s29, 1 }
   0x5   : > { %p401_p2 = scmp.lt.s32.totalorder %s2385_s29, 5 }
   0x6   : > { %s3594_s30 = smov (%p33_p0, %s32_s30), 0  ;;  %s3596_s14 = smov (!%p33_p0, %s35_s14), %s2381_s28 }
   0x7   : > { %p402_p3 = pnand %p2098_p1, %p401_p2  ;;  %p37_p4 = scmp.ge.s32.totalorder %s3596_s14, 2 }
   0x8   : > { %v467_v0 = vld [vmem:[%s3530_s1] sm:$0x3] (!%p402_p3)  ;;  %vm574_vm0 = vcmask (!%p402_p3), 1041408   ;;  %p450_p5 = scmp.lt.s32.totalorder (!%p402_p3), %s2373_s26, 1  ;;  %v2387_v1 = vmov (!%p402_p3), 0.0   ;;  %vm2388_vm1 = vmmov (!%p402_p3), 0   ;;  %v843_v51 = vlaneseq (!%p402_p3) }
   0x9   : > { %s3598_s14 = smov (%p37_p4, %s3596_s14), 0  ;;  %405 = sbr.rel (%p402_p3) target bundleno = 629 (0x275), region = 72 }
   0xa   : > { %2200 = vmatprep.subr.bf16.mxu0 (!%p402_p3), %v2387_v1  ;;  %v576_v2 = vsel (!%p402_p3), %vm574_vm0, %v467_v0, 0  ;;  %2202 = vmatprep.mubr.msk.bf16.mxu0 (!%p402_p3), %vm2388_vm1, %v2387_v1  ;;  %s2105_s17 = smul.u32 (!%p402_p3), 192, %s2369_s25  ;;  %vm528_vm2 = vcmask (!%p402_p3), 31744   ;;  %v474_v48 = vld [vmem:[%s3536_s7] sm:$0xf] (!%p402_p3)  ;;  %vm1626_vm3 = vcmask (!%p402_p3), 1043456  }
   0xb   : > { %2201 = vmatpush3.bf16.msra.mxu0 (!%p402_p3), %v576_v2  ;;  %2298 = vmatprep.subr.bf16.mxu1 (!%p402_p3), %v2387_v1  ;;  %v1628_v49 = vsel (!%p402_p3), %vm1626_vm3, %v474_v48, 0  ;;  %v2587_v50 = vld [vmem:[%s3539_s10] sm:$0x3] (!%p402_p3)  ;;  %v2597_v53 = vshrl.u32 (!%p402_p3), %v843_v51, 7  ;;  %vm1033_vm9 = vcmask (!%p402_p3), 64512  }
   0xc   : > { %2299 = vmatpush3.bf16.msra.mxu1 (!%p402_p3), %v576_v2  ;;  %2250 = vmatprep.mubr.msk.bf16.mxu1 (!%p402_p3), %vm2388_vm1, %v2387_v1  ;;  %v2602_v54 = vld [vmem:[%s3531_s2] ss:$0 sm:$0xff] (!%p402_p3) }
   0xd   : > { %2300 = vmatprep.subr.msk.bf16.mxu1 (!%p402_p3), %vm1626_vm3, %v474_v48  ;;  %v2609_v55 = vld [vmem:[%s3532_s3] ss:$0 sm:$0xff] (!%p402_p3)  ;;  %vm877_vm7 = vcmp.ge.s32.totalorder (!%p402_p3), %v2597_v53, 1  ;;  %v2626_v2 = vadd.s32 (!%p402_p3), 16, %v2597_v53  ;;  %v1396_v51 = vsub.s32 (!%p402_p3), 6, %v2597_v53 }
   0xf   : > { %vm912_vm15 = vcmp.le.s32.totalorder (!%p402_p3), %v2626_v2, 16 }
  0x10   : > { %s3600_s26 = smov (!%p450_p5, %s2373_s26), 1 }
  0x11   : > { %s2302_s18 = smul.u32 432, %s3600_s26  ;;  %s2102_s15 = sshll.u32 %s3600_s26, 5 }
  0x13   : > { %s454_s21 = scalar_lea.vmem %s3529_s0, %s2302_s18 }
  0x14   : > { %s2508_s22 = scalar_lea.vmem %s454_s21, %s2105_s17  ;;  %s2592_s17 = sshll.u32 %s2369_s25, 3 }
  0x15   : > { %v483_v3 = vld [vmem:[%s2508_s22] sm:$0xff]  ;;  %v484_v4 = vld [vmem:[%s2508_s22 + $0x8] sm:$0xff]  ;;  %v485_v6 = vld [vmem:[%s2508_s22 + $0x10] sm:$0xff]  ;;  %v2595_v52 = vstv %s2592_s17  ;;  %p458_p6 = scmp.lt.s32.totalorder %s2592_s17, 15 }
  0x16   : > { %v513_v5 = vpack.c.bf16 %v484_v4, %v483_v3  ;;  %v486_v7 = vld [vmem:[%s2508_s22 + $0x18] sm:$0xff]  ;;  %v507_v8 = vld [vmem:[%s2508_s22 + $0xc0] sm:$0xff]  ;;  %v508_v10 = vld [vmem:[%s2508_s22 + $0xc8] sm:$0xff]  ;;  %vm847_vm4 = vcmp.ge.s32.totalorder %v2595_v52, 1  ;;  %vm857_vm5 = vcmp.le.s32.totalorder %v2595_v52, 16  ;;  %v841_v60 = vadd.s32 8, %v2595_v52 }
  0x17   : > { %v514_v9 = vpack.c.bf16 %v486_v7, %v485_v6  ;;  %v525_v11 = vpack.c.bf16 %v508_v10, %v507_v8  ;;  %v509_v12 = vld [vmem:[%s2508_s22 + $0xd0] sm:$0xff]  ;;  %v510_v13 = vld [vmem:[%s2508_s22 + $0xd8] sm:$0xff]  ;;  %v487_v14 = vld [vmem:[%s2508_s22 + $0x20] sm:$0xff]  ;;  %v835_v58 = vadd.s32 2, %v2595_v52  ;;  %s3602_s17 = smov (!%p458_p6, %s2592_s17), 15 }
  0x18   : > { %2203 = vmatmul.mubr.msk.bf16.vlgmr.msra.gmra.mrb[0].mxu0 %vm528_vm2, %v513_v5  ;;  %v488_v15 = vld [vmem:[%s2508_s22 + $0x28] sm:$0xff]  ;;  %v526_v16 = vpack.c.bf16 %v510_v13, %v509_v12  ;;  %v511_v18 = vld [vmem:[%s2508_s22 + $0xe0] sm:$0xff]  ;;  %v489_v20 = vld [vmem:[%s2508_s22 + $0x30] sm:$0xff]  ;;  %vm855_vm10 = vcmp.ge.s32.totalorder %v841_v60, 1  ;;  %vm865_vm11 = vcmp.le.s32.totalorder %v841_v60, 16 }
  0x19   : > { %2206 = vmatprep.mubr.msk.bf16.mxu0 %vm2388_vm1, %v2387_v1  ;;  %2251 = vmatmul.mubr.msk.bf16.vlgmr.msra.gmra.mrb[0].mxu1 %vm528_vm2, %v525_v11  ;;  %v515_v17 = vpack.c.bf16 %v488_v15, %v487_v14  ;;  %v512_v19 = vld [vmem:[%s2508_s22 + $0xe8] sm:$0xff]  ;;  %v490_v21 = vld [vmem:[%s2508_s22 + $0x38] sm:$0xff]  ;;  %v491_v24 = vld [vmem:[%s2508_s22 + $0x40] sm:$0xff] }
  0x1a   : > { %2254 = vmatprep.mubr.msk.bf16.mxu1 %vm2388_vm1, %v2387_v1  ;;  %v527_v22 = vpack.c.bf16 %v512_v19, %v511_v18  ;;  %v516_v23 = vpack.c.bf16 %v490_v21, %v489_v20  ;;  %v492_v25 = vld [vmem:[%s2508_s22 + $0x48] sm:$0xff]  ;;  %v493_v27 = vld [vmem:[%s2508_s22 + $0x50] sm:$0xff]  ;;  %v494_v28 = vld [vmem:[%s2508_s22 + $0x58] sm:$0xff]  ;;  %2263 = vmatpush3.bf16.msra.mxu1 %v1628_v49 }
  0x1b   : > { %v517_v26 = vpack.c.bf16 %v492_v25, %v491_v24  ;;  %v518_v29 = vpack.c.bf16 %v494_v28, %v493_v27  ;;  %v495_v30 = vld [vmem:[%s2508_s22 + $0x60] sm:$0xff]  ;;  %v496_v31 = vld [vmem:[%s2508_s22 + $0x68] sm:$0xff]  ;;  %v497_v33 = vld [vmem:[%s2508_s22 + $0x70] sm:$0xff]  ;;  %2301 = vmatprep.subr.msk.bf16.mxu1 %vm574_vm0, %v2587_v50 }
  0x1c   : > { %v519_v32 = vpack.c.bf16 %v496_v31, %v495_v30  ;;  %v498_v34 = vld [vmem:[%s2508_s22 + $0x78] sm:$0xff]  ;;  %v499_v36 = vld [vmem:[%s2508_s22 + $0x80] sm:$0xff]  ;;  %v500_v37 = vld [vmem:[%s2508_s22 + $0x88] sm:$0xff]  ;;  %v1134_v30 = vsub.s32 1, %v2597_v53 }
  0x1d   : > { %v520_v35 = vpack.c.bf16 %v498_v34, %v497_v33  ;;  %v521_v38 = vpack.c.bf16 %v500_v37, %v499_v36  ;;  %v501_v39 = vld [vmem:[%s2508_s22 + $0x90] sm:$0xff]  ;;  %v502_v40 = vld [vmem:[%s2508_s22 + $0x98] sm:$0xff]  ;;  %v503_v42 = vld [vmem:[%s2508_s22 + $0xa0] sm:$0xff]  ;;  %v1186_v34 = vsub.s32 2, %v2597_v53 }
  0x1e   : > { %v522_v41 = vpack.c.bf16 %v502_v40, %v501_v39  ;;  %v504_v43 = vld [vmem:[%s2508_s22 + $0xa8] sm:$0xff]  ;;  %v505_v45 = vld [vmem:[%s2508_s22 + $0xb0] sm:$0xff]  ;;  %v506_v46 = vld [vmem:[%s2508_s22 + $0xb8] sm:$0xff] }
  0x1f   : > { %v523_v44 = vpack.c.bf16 %v504_v43, %v503_v42  ;;  %v524_v47 = vpack.c.bf16 %v506_v46, %v505_v45  ;;  %vm2612_vm6 = vmand %vm847_vm4, %vm857_vm5  ;;  %v470_v39 = vld [vmem:[%s3533_s4] sm:$0xff]  ;;  %v1343_v45 = vsub.s32 5, %v2597_v53 }
  0x20   : > { %2207 = vmatmul.mubr.msk.bf16.gmra.mrb[4].mxu0 %vm528_vm2, %v514_v9  ;;  %vm880_vm8 = vmand %vm2612_vm6, %vm877_vm7 }
  0x21   : > { %2210 = vmatprep.mubr.msk.bf16.mxu0 %vm2388_vm1, %v2387_v1  ;;  %2255 = vmatmul.mubr.msk.bf16.gmra.mrb[4].mxu1 %vm528_vm2, %v526_v16  ;;  %vm2631_vm14 = vmand %vm855_vm10, %vm865_vm11 }
  0x22   : > { %2258 = vmatprep.mubr.msk.bf16.mxu1 %vm2388_vm1, %v2387_v1  ;;  %vm904_vm3 = vmand %vm2631_vm14, %vm877_vm7 }
  0x23   : > { %vm915_vm4 = vmand %vm2612_vm6, %vm912_vm15 }
  0x24   : > { %vm2695_vm10 = vmand %vm2631_vm14, %vm912_vm15 }
  0x28   : > { %2211 = vmatmul.mubr.msk.bf16.gmra.mrb[8].mxu0 %vm528_vm2, %v515_v17 }
  0x29   : > { %2214 = vmatprep.mubr.msk.bf16.mxu0 %vm2388_vm1, %v2387_v1  ;;  %2259 = vmatmul.mubr.msk.bf16.gmra.mrb[8].mxu1 %vm528_vm2, %v527_v22 }
  0x30   : > { %2215 = vmatmul.mubr.msk.bf16.gmra.mrb[12].mxu0 %vm528_vm2, %v516_v23 }
  0x31   : > { %2218 = vmatprep.mubr.msk.bf16.mxu0 %vm2388_vm1, %v2387_v1 }
  0x38   : > { %2219 = vmatmul.mubr.msk.bf16.gmra.mrb[16].mxu0 %vm528_vm2, %v517_v26  ;;  %v842_v26 = vadd.s32 9, %v2595_v52 }
  0x39   : > { %2222 = vmatprep.mubr.msk.bf16.mxu0 %vm2388_vm1, %v2387_v1 }
  0x40   : > { %2223 = vmatmul.mubr.msk.bf16.gmra.mrb[20].mxu0 %vm528_vm2, %v518_v29  ;;  %v1082_v29 = vsub.s32 0, %v2597_v53 }
  0x41   : > { %2226 = vmatprep.mubr.msk.bf16.mxu0 %vm2388_vm1, %v2387_v1 }
  0x48   : > { %2227 = vmatmul.mubr.msk.bf16.gmra.mrb[24].mxu0 %vm528_vm2, %v519_v32 }
  0x49   : > { %2230 = vmatprep.mubr.msk.bf16.mxu0 %vm2388_vm1, %v2387_v1 }
  0x50   : > { %2231 = vmatmul.mubr.msk.bf16.gmra.mrb[28].mxu0 %vm528_vm2, %v520_v35  ;;  %v1239_v35 = vsub.s32 3, %v2597_v53 }
  0x51   : > { %2234 = vmatprep.mubr.msk.bf16.mxu0 %vm2388_vm1, %v2387_v1 }
  0x58   : > { %2235 = vmatmul.mubr.msk.bf16.gmra.mrb[32].mxu0 %vm528_vm2, %v521_v38 }
  0x59   : > { %2238 = vmatprep.mubr.msk.bf16.mxu0 %vm2388_vm1, %v2387_v1 }
  0x60   : > { %2239 = vmatmul.mubr.msk.bf16.gmra.mrb[36].mxu0 %vm528_vm2, %v522_v41 }
  0x61   : > { %2242 = vmatprep.mubr.msk.bf16.mxu0 %vm2388_vm1, %v2387_v1 }
  0x68   : > { %2243 = vmatmul.mubr.msk.bf16.gmra.mrb[40].mxu0 %vm528_vm2, %v523_v44  ;;  %v1291_v44 = vsub.s32 4, %v2597_v53 }
  0x69   : > { %2246 = vmatprep.mubr.msk.bf16.mxu0 %vm2388_vm1, %v2387_v1  ;;  %v834_v1 = vadd.s32 1, %v2595_v52 }
  0x6b   : > { %vm848_vm12 = vcmp.ge.s32.totalorder %v834_v1, 1  ;;  %vm858_vm13 = vcmp.le.s32.totalorder %v834_v1, 16 }
  0x6c   : > { %vm2641_vm1 = vmand %vm848_vm12, %vm858_vm13  ;;  %vm849_vm13 = vcmp.ge.s32.totalorder %v835_v58, 1 }
  0x6d   : > { %vm2666_vm5 = vmand %vm2641_vm1, %vm877_vm7 }
  0x6e   : > { %vm2723_vm12 = vmand %vm2641_vm1, %vm912_vm15 }
  0x70   : > { %2247 = vmatmul.mubr.msk.bf16.gmra.mrb[44].mxu0 %vm528_vm2, %v524_v47 }
  0xeb   : > { %v612_v56 = vpop.f32.mrb[0].mxu0 }
  0xec   : > { %v737_v57 = vmul.f32 %v2602_v54, %v612_v56  ;;  %v2204_v59 = vpop.f32.mrb[1].mxu0  ;;  %v708_v7 = vpop.f32.mrb[0].mxu1  ;;  %v1448_v56 = vsub.s32 7, %v2597_v53 }
  0xed   : > { %v615_v61 = vpop.f32.mrb[2].mxu0  ;;  %v761_v9 = vmul.f32 %v2602_v54, %v708_v7  ;;  %v2252_v11 = vpop.f32.mrb[1].mxu1  ;;  %v2714_v7 = vrot.slane %v470_v39, %v1239_v35 }
  0xee   : > { %v773_v62 = vadd.f32 %v2609_v55, %v737_v57  ;;  %v738_v63 = vmul.f32 %v2602_v54, %v615_v61  ;;  %v2205_v0 = vpop.f32.mrb[3].mxu0  ;;  %v711_v15 = vpop.f32.mrb[2].mxu1 }
  0xef   : > { %v797_v18 = vadd.f32 %v2609_v55, %v761_v9  ;;  %v762_v19 = vmul.f32 %v2602_v54, %v711_v15  ;;  %v2253_v20 = vpop.f32.mrb[3].mxu1  ;;  %v2716_v9 = vrot.slane %v470_v39, %v1291_v44  ;;  %v2729_v15 = vadd.s32 3, %v2595_v52 }
  0xf0   : > { %v803_v3 = vmax.f32 %v773_v62, 0.0  ;;  %v774_v4 = vadd.f32 %v2609_v55, %v738_v63  ;;  %v2699_v62 = vrot.slane %v470_v39, %v1082_v29  ;;  %v2741_v20 = vrot.slane %v470_v39, %v1343_v45 }
  0xf1   : > { %v827_v24 = vmax.f32 %v797_v18, 0.0  ;;  %v798_v25 = vadd.f32 %v2609_v55, %v762_v19 }
  0xf2   : > { %v1003_v5 = vsel %vm880_vm8, %v803_v3, 0.0  ;;  %v804_v6 = vmax.f32 %v774_v4, 0.0  ;;  %vm866_vm8 = vcmp.le.s32.totalorder %v842_v26, 16 }
  0xf3   : > { %1034 = vst.msk [vmem:[#allocation2] sm:$0xff] %vm1033_vm9, %v1003_v5  ;;  %v620_v8 = vpop.f32.mrb[4].mxu0  ;;  %v1027_v32 = vsel %vm904_vm3, %v827_v24, 0.0  ;;  %v828_v33 = vmax.f32 %v798_v25, 0.0  ;;  %v2710_v5 = vrot.slane %v470_v39, %v1134_v30 }
  0xf4   : > { %v1004_v12 = vsel %vm2612_vm6, %v804_v6, 0.0  ;;  %v739_v13 = vmul.f32 %v2602_v54, %v620_v8  ;;  %v2208_v14 = vpop.f32.mrb[5].mxu0  ;;  %1058 = vst.msk [vmem:[#allocation2 + $0xc0] sm:$0xff] %vm1033_vm9, %v1027_v32  ;;  %v716_v38 = vpop.f32.mrb[4].mxu1  ;;  %vm856_vm6 = vcmp.ge.s32.totalorder %v842_v26, 1  ;;  %v2712_v6 = vrot.slane %v470_v39, %v1186_v34 }
  0xf5   : > { %1035 = vst.msk [vmem:[#allocation2 + $0x8] sm:$0xff] %vm1033_vm9, %v1004_v12  ;;  %v623_v16 = vpop.f32.mrb[6].mxu0  ;;  %v1028_v41 = vsel %vm2631_vm14, %v828_v33, 0.0  ;;  %v763_v42 = vmul.f32 %v2602_v54, %v716_v38  ;;  %v2256_v43 = vpop.f32.mrb[5].mxu1  ;;  %vm2706_vm11 = vmand %vm856_vm6, %vm866_vm8  ;;  %vm859_vm14 = vcmp.le.s32.totalorder %v835_v58, 16  ;;  %v2752_v32 = vrot.slane %v470_v39, %v1448_v56 }
  0xf6   : > { %v775_v21 = vadd.f32 %v2609_v55, %v739_v13  ;;  %v740_v22 = vmul.f32 %v2602_v54, %v623_v16  ;;  %v2209_v23 = vpop.f32.mrb[7].mxu0  ;;  %1059 = vst.msk [vmem:[#allocation2 + $0xc8] sm:$0xff] %vm1033_vm9, %v1028_v41  ;;  %v719_v49 = vpop.f32.mrb[6].mxu1  ;;  %vm2737_vm3 = vmand %vm2706_vm11, %vm877_vm7  ;;  %v2780_v56 = vadd.s32 4, %v2595_v52 }
  0xf7   : > { %v799_v59 = vadd.f32 %v2609_v55, %v763_v42  ;;  %v2257_v61 = vpop.f32.mrb[7].mxu1  ;;  %v764_v3 = vmul.f32 %v2602_v54, %v719_v49  ;;  %vm2814_vm8 = vmand %vm2706_vm11, %vm912_vm15 }
  0xf8   : > { %v805_v27 = vmax.f32 %v775_v21, 0.0  ;;  %v776_v28 = vadd.f32 %v2609_v55, %v740_v22 }
  0xf9   : > { %v829_v8 = vmax.f32 %v799_v59, 0.0  ;;  %v800_v14 = vadd.f32 %v2609_v55, %v764_v3 }
  0xfa   : > { %v1005_v36 = vsel %vm915_vm4, %v805_v27, 0.0  ;;  %v806_v37 = vmax.f32 %v776_v28, 0.0  ;;  %v1064_v16 = vld [vmem:[#allocation2] sm:$0xff]  ;;  %v2746_v27 = vrot.slane %v470_v39, %v1396_v51  ;;  %vm850_vm4 = vcmp.ge.s32.totalorder %v2729_v15, 1 }
  0xfb   : > { %1036 = vst.msk [vmem:[#allocation2 + $0x10] sm:$0xff] %vm1033_vm9, %v1005_v36  ;;  %v628_v40 = vpop.f32.mrb[8].mxu0  ;;  %v1029_v18 = vsel %vm2695_vm10, %v829_v8, 0.0  ;;  %v830_v25 = vmax.f32 %v800_v14, 0.0 }
  0xfc   : > { %v1006_v46 = vsel %vm2666_vm5, %v806_v37, 0.0  ;;  %v741_v47 = vmul.f32 %v2602_v54, %v628_v40  ;;  %v2212_v48 = vpop.f32.mrb[9].mxu0  ;;  %v1116_v13 = vld [vmem:[#allocation2 + $0x1] sm:$0xff]  ;;  %1060 = vst.msk [vmem:[#allocation2 + $0xd0] sm:$0xff] %vm1033_vm9, %v1029_v18  ;;  %v724_v26 = vpop.f32.mrb[8].mxu1  ;;  %v1084_v40 = vmul.f32 %v2699_v62, %v1064_v16  ;;  %vm860_vm5 = vcmp.le.s32.totalorder %v2729_v15, 16 }
  0xfd   : > { %1037 = vst.msk [vmem:[#allocation2 + $0x18] sm:$0xff] %vm1033_vm9, %v1006_v46  ;;  %v631_v57 = vpop.f32.mrb[10].mxu0  ;;  %v1065_v23 = vld [vmem:[#allocation2 + $0x8] sm:$0xff]  ;;  %v1136_v29 = vmul.f32 %v2710_v5, %v1116_v13  ;;  %v765_v31 = vmul.f32 %v2602_v54, %v724_v26  ;;  %v2260_v17 = vpop.f32.mrb[9].mxu1  ;;  %v1030_v37 = vsel %vm2737_vm3, %v830_v25, 0.0  ;;  %v2793_v16 = vadd.s32 6, %v2595_v52  ;;  %vm2829_vm10 = vmand %vm850_vm4, %vm860_vm5 }
  0xfe   : > { %v777_v63 = vadd.f32 %v2609_v55, %v741_v47  ;;  %v742_v0 = vmul.f32 %v2602_v54, %v631_v57  ;;  %v2213_v1 = vpop.f32.mrb[11].mxu0  ;;  %v727_v38 = vpop.f32.mrb[10].mxu1  ;;  %v1085_v41 = vmul.f32 %v2699_v62, %v1065_v23  ;;  %1061 = vst.msk [vmem:[#allocation2 + $0xd8] sm:$0xff] %vm1033_vm9, %v1030_v37  ;;  %v1168_v48 = vld [vmem:[#allocation2 + $0x2] sm:$0xff]  ;;  %v2796_v18 = vadd.s32 7, %v2595_v52 }
  0xff   : > { %v801_v42 = vadd.f32 %v2609_v55, %v765_v31  ;;  %v2261_v43 = vpop.f32.mrb[11].mxu1  ;;  %v766_v51 = vmul.f32 %v2602_v54, %v727_v38  ;;  %v1152_v57 = vadd.f32 %v1136_v29, %v1084_v40  ;;  %v1188_v1 = vmul.f32 %v2712_v6, %v1168_v48  ;;  %v1390_v25 = vld [vmem:[#allocation2 + $0xc0] sm:$0xff]  ;;  %v2806_v17 = vld [vmem:[#allocation2 + $0xc8] sm:$0xff] }
 0x100   : > { %v807_v10 = vmax.f32 %v777_v63, 0.0  ;;  %v778_v11 = vadd.f32 %v2609_v55, %v742_v0  ;;  %v2784_v63 = vadd.s32 5, %v2595_v52 }
 0x101   : > { %v831_v59 = vmax.f32 %v801_v42, 0.0  ;;  %v802_v0 = vadd.f32 %v2609_v55, %v766_v51  ;;  %v2852_v51 = vmul.f32 %v1390_v25, %v2714_v7 }
 0x102   : > { %v1007_v21 = vsel %vm2641_vm1, %v807_v10, 0.0  ;;  %v808_v22 = vmax.f32 %v778_v11, 0.0  ;;  %v1117_v24 = vld [vmem:[#allocation2 + $0x9] sm:$0xff]  ;;  %vm2759_vm1 = vmand %vm849_vm13, %vm859_vm14  ;;  %vm861_vm13 = vcmp.le.s32.totalorder %v2780_v56, 16  ;;  %vm852_vm3 = vcmp.ge.s32.totalorder %v2784_v63, 1 }
 0x103   : > { %1038 = vst.msk [vmem:[#allocation2 + $0x20] sm:$0xff] %vm1033_vm9, %v1007_v21  ;;  %v636_v28 = vpop.f32.mrb[12].mxu0  ;;  %v1137_v30 = vmul.f32 %v2710_v5, %v1117_v24  ;;  %v1169_v49 = vld [vmem:[#allocation2 + $0xa] sm:$0xff]  ;;  %vm886_vm6 = vmand %vm2759_vm1, %vm877_vm7  ;;  %v1031_v10 = vsel %vm2706_vm11, %v831_v59, 0.0  ;;  %v1204_v21 = vadd.f32 %v1188_v1, %v1152_v57  ;;  %v832_v31 = vmax.f32 %v802_v0, 0.0 }
 0x104   : > { %v1008_v33 = vsel %vm2723_vm12, %v808_v22, 0.0  ;;  %v743_v34 = vmul.f32 %v2602_v54, %v636_v28  ;;  %v2216_v36 = vpop.f32.mrb[13].mxu0  ;;  %v1066_v44 = vld [vmem:[#allocation2 + $0x18] sm:$0xff]  ;;  %v1189_v3 = vmul.f32 %v2712_v6, %v1169_v49  ;;  %1062 = vst.msk [vmem:[#allocation2 + $0xe0] sm:$0xff] %vm1033_vm9, %v1031_v10  ;;  %v2849_v49 = vmul.f32 %v2746_v27, %v2806_v17  ;;  %vm2862_vm11 = vmand %vm2829_vm10, %vm877_vm7 }
 0x105   : > { %1039 = vst.msk [vmem:[#allocation2 + $0x28] sm:$0xff] %vm1033_vm9, %v1008_v33  ;;  %v639_v39 = vpop.f32.mrb[14].mxu0  ;;  %v1153_v58 = vadd.f32 %v1137_v30, %v1085_v41  ;;  %v1241_v8 = vmul.f32 %v2714_v7, %v1066_v44  ;;  %v1086_v40 = vmul.f32 %v2699_v62, %v1066_v44  ;;  %vm851_vm12 = vcmp.ge.s32.totalorder %v2780_v56, 1  ;;  %vm2909_vm14 = vmand %vm2829_vm10, %vm912_vm15 }
 0x106   : > { %v779_v45 = vadd.f32 %v2609_v55, %v743_v34  ;;  %v744_v46 = vmul.f32 %v2602_v54, %v639_v39  ;;  %v2217_v47 = vpop.f32.mrb[15].mxu0  ;;  %v2820_v39 = vsel %vm574_vm0, %v2587_v50, 0  ;;  %v2836_v50 = vld [vmem:[#allocation2 + $0xc1] sm:$0xff]  ;;  %vm2843_vm0 = vmand %vm2759_vm1, %vm912_vm15 }
 0x107   : > { %v1205_v22 = vadd.f32 %v1189_v3, %v1153_v58  ;;  %v1257_v34 = vadd.f32 %v1241_v8, %v1204_v21  ;;  %v2872_v3 = vmul.f32 %v2752_v32, %v2836_v50  ;;  %vm2937_vm4 = vmand %vm851_vm12, %vm861_vm13  ;;  %vm854_vm13 = vcmp.ge.s32.totalorder %v2796_v18, 1 }
 0x108   : > { %v809_v60 = vmax.f32 %v779_v45, 0.0  ;;  %v780_v61 = vadd.f32 %v2609_v55, %v744_v46  ;;  %v2834_v46 = vmul.f32 %v2746_v27, %v1390_v25  ;;  %vm892_vm5 = vmand %vm2937_vm4, %vm877_vm7 }
 0x10a   : > { %v1067_v11 = vld [vmem:[#allocation2 + $0x20] sm:$0xff]  ;;  %v1009_v13 = vsel %vm886_vm6, %v809_v60, 0.0  ;;  %v810_v14 = vmax.f32 %v780_v61, 0.0  ;;  %v1032_v60 = vsel %vm2814_vm8, %v832_v31, 0.0  ;;  %vm2998_vm8 = vmand %vm2937_vm4, %vm912_vm15 }
 0x10b   : > { %v1118_v12 = vld [vmem:[#allocation2 + $0x19] sm:$0xff]  ;;  %1040 = vst.msk [vmem:[#allocation2 + $0x30] sm:$0xff] %vm1033_vm9, %v1009_v13  ;;  %v644_v19 = vpop.f32.mrb[16].mxu0  ;;  %v1242_v23 = vmul.f32 %v2714_v7, %v1067_v11  ;;  %v1087_v35 = vmul.f32 %v2699_v62, %v1067_v11  ;;  %1063 = vst.msk [vmem:[#allocation2 + $0xe8] sm:$0xff] %vm1033_vm9, %v1032_v60 }
 0x10c   : > { %v1293_v24 = vmul.f32 %v2716_v9, %v1118_v12  ;;  %v1138_v26 = vmul.f32 %v2710_v5, %v1118_v12  ;;  %v1119_v28 = vld [vmem:[#allocation2 + $0x21] sm:$0xff]  ;;  %v1010_v29 = vsel %vm2759_vm1, %v810_v14, 0.0  ;;  %v745_v52 = vmul.f32 %v2602_v54, %v644_v19  ;;  %v2220_v30 = vpop.f32.mrb[17].mxu0  ;;  %v2902_v60 = vld [vmem:[%s3534_s5] ss:$0 sm:$0xff] }
 0x10d   : > { %1041 = vst.msk [vmem:[#allocation2 + $0x38] sm:$0xff] %vm1033_vm9, %v1010_v29  ;;  %v647_v33 = vpop.f32.mrb[18].mxu0  ;;  %v1258_v36 = vadd.f32 %v1242_v23, %v1205_v22  ;;  %v1294_v37 = vmul.f32 %v2716_v9, %v1119_v28  ;;  %v1170_v41 = vld [vmem:[#allocation2 + $0x1a] sm:$0xff]  ;;  %v1139_v44 = vmul.f32 %v2710_v5, %v1119_v28  ;;  %v1171_v47 = vld [vmem:[#allocation2 + $0x22] sm:$0xff]  ;;  %vm862_vm1 = vcmp.le.s32.totalorder %v2784_v63, 16 }
 0x10e   : > { %v781_v42 = vadd.f32 %v2609_v55, %v745_v52  ;;  %v746_v43 = vmul.f32 %v2602_v54, %v647_v33  ;;  %v2221_v45 = vpop.f32.mrb[19].mxu0  ;;  %v1309_v15 = vadd.f32 %v1293_v24, %v1257_v34  ;;  %v1154_v59 = vadd.f32 %v1138_v26, %v1086_v40  ;;  %v2882_v19 = vld [vmem:[%s3533_s4 + $0x8] ss:$0 sm:$0xff]  ;;  %vm2988_vm6 = vmand %vm852_vm3, %vm862_vm1 }
 0x10f   : > { %v1310_v0 = vadd.f32 %v1294_v37, %v1258_v36  ;;  %v1345_v1 = vmul.f32 %v2741_v20, %v1170_v41  ;;  %v1346_v11 = vmul.f32 %v2741_v20, %v1171_v47  ;;  %v1190_v13 = vmul.f32 %v2712_v6, %v1170_v41  ;;  %vm3064_vm12 = vmand %vm2988_vm6, %vm912_vm15 }
 0x110   : > { %v811_v57 = vmax.f32 %v781_v42, 0.0  ;;  %v782_v58 = vadd.f32 %v2609_v55, %v746_v43  ;;  %v1155_v23 = vadd.f32 %v1139_v44, %v1087_v35  ;;  %v1191_v31 = vmul.f32 %v2712_v6, %v1171_v47 }
 0x111   : > { %v1361_v21 = vadd.f32 %v1345_v1, %v1309_v15  ;;  %v1206_v33 = vadd.f32 %v1190_v13, %v1154_v59  ;;  %v1362_v36 = vadd.f32 %v1346_v11, %v1310_v0 }
 0x112   : > { %v1011_v8 = vsel %vm2843_vm0, %v811_v57, 0.0  ;;  %v812_v10 = vmax.f32 %v782_v58, 0.0  ;;  %v1378_v12 = vld [vmem:[#allocation2 + $0x30] sm:$0xff]  ;;  %v1207_v15 = vadd.f32 %v1191_v31, %v1155_v23  ;;  %vm853_vm0 = vcmp.ge.s32.totalorder %v2793_v16, 1 }
 0x113   : > { %1042 = vst.msk [vmem:[#allocation2 + $0x40] sm:$0xff] %vm1033_vm9, %v1011_v8  ;;  %v652_v14 = vpop.f32.mrb[20].mxu0  ;;  %v1398_v22 = vmul.f32 %v2746_v27, %v1378_v12  ;;  %v1243_v24 = vmul.f32 %v1378_v12, %v2714_v7  ;;  %v1088_v61 = vmul.f32 %v1378_v12, %v2699_v62  ;;  %v2920_v12 = vld [vmem:[%s3535_s6] ss:$0 sm:$0xff] }
 0x114   : > { %v1012_v25 = vsel %vm2862_vm11, %v812_v10, 0.0  ;;  %v747_v26 = vmul.f32 %v2602_v54, %v652_v14  ;;  %v2224_v28 = vpop.f32.mrb[21].mxu0  ;;  %v1379_v29 = vld [vmem:[#allocation2 + $0x38] sm:$0xff]  ;;  %vm863_vm11 = vcmp.le.s32.totalorder %v2793_v16, 16 }
 0x115   : > { %v1430_v52 = vld [vmem:[#allocation2 + $0x31] sm:$0xff]  ;;  %1043 = vst.msk [vmem:[#allocation2 + $0x48] sm:$0xff] %vm1033_vm9, %v1012_v25  ;;  %v655_v34 = vpop.f32.mrb[22].mxu0  ;;  %v1399_v37 = vmul.f32 %v2746_v27, %v1379_v29  ;;  %v1414_v38 = vadd.f32 %v1398_v22, %v1361_v21  ;;  %v1244_v45 = vmul.f32 %v1379_v29, %v2714_v7  ;;  %v1259_v44 = vadd.f32 %v1243_v24, %v1206_v33  ;;  %vm3095_vm3 = vmand %vm853_vm0, %vm863_vm11 }
 0x116   : > { %v1482_v30 = vld [vmem:[#allocation2 + $0x32] sm:$0xff]  ;;  %v1450_v40 = vmul.f32 %v2752_v32, %v1430_v52  ;;  %v783_v41 = vadd.f32 %v2609_v55, %v747_v26  ;;  %v748_v42 = vmul.f32 %v2602_v54, %v655_v34  ;;  %v2225_v43 = vpop.f32.mrb[23].mxu0  ;;  %v1295_v57 = vmul.f32 %v1430_v52, %v2716_v9  ;;  %vm898_vm1 = vmand %vm3095_vm3, %vm877_vm7 }
 0x117   : > { %v1502_v47 = vmul.f32 %v2882_v19, %v1482_v30  ;;  %v1415_v35 = vadd.f32 %v1399_v37, %v1362_v36  ;;  %v1260_v8 = vadd.f32 %v1244_v45, %v1207_v15  ;;  %v1347_v10 = vmul.f32 %v1482_v30, %v2741_v20 }
 0x118   : > { %v1466_v48 = vadd.f32 %v1450_v40, %v1414_v38  ;;  %v813_v58 = vmax.f32 %v783_v41, 0.0  ;;  %v784_v59 = vadd.f32 %v2609_v55, %v748_v42  ;;  %v1089_v11 = vmul.f32 %v1379_v29, %v2699_v62 }
 0x119   : > { %v1311_v23 = vadd.f32 %v1295_v57, %v1259_v44  ;;  %v1140_v24 = vmul.f32 %v1430_v52, %v2710_v5  ;;  %v1192_v29 = vmul.f32 %v1482_v30, %v2712_v6 }
 0x11a   : > { %v1518_v1 = vadd.f32 %v1502_v47, %v1466_v48  ;;  %v1013_v13 = vsel %vm2829_vm10, %v813_v58, 0.0  ;;  %v814_v14 = vmax.f32 %v784_v59, 0.0  ;;  %v1431_v21 = vld [vmem:[#allocation2 + $0x39] sm:$0xff]  ;;  %vm3013_vm10 = vmand %vm2988_vm6, %vm877_vm7 }
 0x11b   : > { %v1483_v22 = vld [vmem:[#allocation2 + $0x3a] sm:$0xff]  ;;  %1044 = vst.msk [vmem:[#allocation2 + $0x50] sm:$0xff] %vm1033_vm9, %v1013_v13  ;;  %v660_v25 = vpop.f32.mrb[24].mxu0  ;;  %v1451_v4 = vmul.f32 %v2752_v32, %v1431_v21  ;;  %v1296_v28 = vmul.f32 %v1431_v21, %v2716_v9  ;;  %v1141_v48 = vmul.f32 %v1431_v21, %v2710_v5  ;;  %v1156_v47 = vadd.f32 %v1140_v24, %v1088_v61 }
 0x11c   : > { %v1540_v26 = vmul.f32 %v2902_v60, %v1518_v1  ;;  %v1014_v31 = vsel %vm2909_vm14, %v814_v14, 0.0  ;;  %v749_v52 = vmul.f32 %v2602_v54, %v660_v25  ;;  %v2228_v34 = vpop.f32.mrb[25].mxu0  ;;  %v1503_v36 = vmul.f32 %v2882_v19, %v1483_v22  ;;  %v1380_v38 = vld [vmem:[#allocation2 + $0x48] sm:$0xff] }
 0x11d   : > { %v1348_v37 = vmul.f32 %v1483_v22, %v2741_v20  ;;  %1045 = vst.msk [vmem:[#allocation2 + $0x58] sm:$0xff] %vm1033_vm9, %v1014_v31  ;;  %v663_v30 = vpop.f32.mrb[26].mxu0  ;;  %v1467_v40 = vadd.f32 %v1451_v4, %v1415_v35  ;;  %v1312_v42 = vadd.f32 %v1296_v28, %v1260_v8  ;;  %v1400_v43 = vmul.f32 %v2746_v27, %v1380_v38 }
 0x11e   : > { %v1562_v41 = vadd.f32 %v2920_v12, %v1540_v26  ;;  %v785_v56 = vadd.f32 %v2609_v55, %v749_v52  ;;  %v750_v45 = vmul.f32 %v2602_v54, %v663_v30  ;;  %v2229_v44 = vpop.f32.mrb[27].mxu0  ;;  %v1363_v58 = vadd.f32 %v1347_v10, %v1311_v23 }
 0x11f   : > { %v1519_v15 = vadd.f32 %v1503_v36, %v1467_v40  ;;  %v1364_v59 = vadd.f32 %v1348_v37, %v1312_v42  ;;  %v1157_v1 = vadd.f32 %v1141_v48, %v1089_v11  ;;  %v1193_v8 = vmul.f32 %v1483_v22, %v2712_v6 }
 0x120   : > { %v1578_v57 = vmax.f32 %v1562_v41, 0.0  ;;  %v815_v35 = vmax.f32 %v785_v56, 0.0  ;;  %v786_v0 = vadd.f32 %v2609_v55, %v750_v45  ;;  %v1416_v14 = vadd.f32 %v1400_v43, %v1363_v58 }
 0x121   : > { %v1541_v13 = vmul.f32 %v2902_v60, %v1519_v15  ;;  %v1208_v21 = vadd.f32 %v1192_v29, %v1156_v47  ;;  %v1245_v61 = vmul.f32 %v1380_v38, %v2714_v7  ;;  %v1209_v10 = vadd.f32 %v1193_v8, %v1157_v1 }
 0x122   : > { %v1015_v24 = vsel %vm892_vm5, %v815_v35, 0.0  ;;  %v816_v25 = vmax.f32 %v786_v0, 0.0  ;;  %v1381_v4 = vld [vmem:[#allocation2 + $0x50] sm:$0xff]  ;;  %v2962_v23 = vmul.f32 %v1380_v38, %v2699_v62  ;;  %vm864_vm14 = vcmp.le.s32.totalorder %v2796_v18, 16  ;;  %vm933_vm5 = vmand %vm3095_vm3, %vm912_vm15 }
 0x123   : > { %v2957_v26 = vld [vmem:[#allocation2 + $0x49] sm:$0xff]  ;;  %1046 = vst.msk [vmem:[#allocation2 + $0x60] sm:$0xff] %vm1033_vm9, %v1015_v24  ;;  %v668_v11 = vpop.f32.mrb[28].mxu0  ;;  %v1563_v22 = vadd.f32 %v2920_v12, %v1541_v13  ;;  %v1401_v29 = vmul.f32 %v2746_v27, %v1381_v4  ;;  %v1246_v40 = vmul.f32 %v1381_v4, %v2714_v7  ;;  %v1261_v41 = vadd.f32 %v1245_v61, %v1208_v21 }
 0x124   : > { %v2959_v28 = vld [vmem:[#allocation2 + $0x4a] sm:$0xff]  ;;  %v1452_v31 = vmul.f32 %v2752_v32, %v2957_v26  ;;  %v1016_v34 = vsel %vm2937_vm4, %v816_v25, 0.0  ;;  %v751_v36 = vmul.f32 %v2602_v54, %v668_v11  ;;  %v2232_v37 = vpop.f32.mrb[29].mxu0  ;;  %v2976_v30 = vld [vmem:[#allocation2 + $0x52] sm:$0xff]  ;;  %v1297_v13 = vmul.f32 %v2957_v26, %v2716_v9  ;;  %vm3161_vm4 = vmand %vm854_vm13, %vm864_vm14 }
 0x125   : > { %v1504_v52 = vmul.f32 %v2882_v19, %v2959_v28  ;;  %v2974_v38 = vld [vmem:[#allocation2 + $0x51] sm:$0xff]  ;;  %1047 = vst.msk [vmem:[#allocation2 + $0x68] sm:$0xff] %vm1033_vm9, %v1016_v34  ;;  %v671_v42 = vpop.f32.mrb[30].mxu0  ;;  %v1579_v43 = vmax.f32 %v1563_v22, 0.0  ;;  %v1417_v56 = vadd.f32 %v1401_v29, %v1364_v59  ;;  %v1505_v59 = vmul.f32 %v2882_v19, %v2976_v30 }
 0x126   : > { %v1453_v45 = vmul.f32 %v2752_v32, %v2974_v38  ;;  %v1468_v44 = vadd.f32 %v1452_v31, %v1416_v14  ;;  %v787_v48 = vadd.f32 %v2609_v55, %v751_v36  ;;  %v752_v47 = vmul.f32 %v2602_v54, %v671_v42  ;;  %v2233_v58 = vpop.f32.mrb[31].mxu0 }
 0x127   : > { %v1262_v35 = vadd.f32 %v1246_v40, %v1209_v10  ;;  %v1594_v1 = vpack.c.bf16 %v1579_v43, %v1578_v57  ;;  %v1298_v61 = vmul.f32 %v2974_v38, %v2716_v9  ;;  %v1349_v24 = vmul.f32 %v2959_v28, %v2741_v20 }
 0x128   : > { %v1469_v8 = vadd.f32 %v1453_v45, %v1417_v56  ;;  %v1520_v63 = vadd.f32 %v1504_v52, %v1468_v44  ;;  %v817_v14 = vmax.f32 %v787_v48, 0.0  ;;  %v788_v21 = vadd.f32 %v2609_v55, %v752_v47 }
 0x129   : > { %2264 = vmatprep.mubr.msk.bf16.mxu1 %vm1033_vm9, %v1594_v1  ;;  %v1313_v10 = vadd.f32 %v1297_v13, %v1261_v41  ;;  %v1350_v11 = vmul.f32 %v2976_v30, %v2741_v20  ;;  %v1314_v31 = vadd.f32 %v1298_v61, %v1262_v35  ;;  %v1091_v34 = vmul.f32 %v1381_v4, %v2699_v62 }
 0x12a   : > { %v1521_v57 = vadd.f32 %v1505_v59, %v1469_v8  ;;  %v1542_v25 = vmul.f32 %v2902_v60, %v1520_v63  ;;  %v1017_v22 = vsel %vm2998_vm8, %v817_v14, 0.0  ;;  %v818_v29 = vmax.f32 %v788_v21, 0.0  ;;  %v3025_v52 = vld [vmem:[#allocation2 + $0x60] sm:$0xff] }
 0x12b   : > { %1048 = vst.msk [vmem:[#allocation2 + $0x70] sm:$0xff] %vm1033_vm9, %v1017_v22  ;;  %v676_v36 = vpop.f32.mrb[32].mxu0  ;;  %v1365_v41 = vadd.f32 %v1349_v24, %v1313_v10  ;;  %v1402_v42 = vmul.f32 %v2746_v27, %v3025_v52  ;;  %v1366_v44 = vadd.f32 %v1350_v11, %v1314_v31  ;;  %v1142_v58 = vmul.f32 %v2957_v26, %v2710_v5 }
 0x12c   : > { %v1543_v37 = vmul.f32 %v2902_v60, %v1521_v57  ;;  %v1564_v40 = vadd.f32 %v2920_v12, %v1542_v25  ;;  %v1018_v43 = vsel %vm3013_vm10, %v818_v29, 0.0  ;;  %v753_v56 = vmul.f32 %v2602_v54, %v676_v36  ;;  %v2236_v45 = vpop.f32.mrb[33].mxu0  ;;  %v3036_v48 = vld [vmem:[#allocation2 + $0x68] sm:$0xff] }
 0x12d   : > { %v3038_v4 = vld [vmem:[#allocation2 + $0x61] sm:$0xff]  ;;  %1049 = vst.msk [vmem:[#allocation2 + $0x78] sm:$0xff] %vm1033_vm9, %v1018_v43  ;;  %v679_v59 = vpop.f32.mrb[34].mxu0  ;;  %v1403_v1 = vmul.f32 %v2746_v27, %v3036_v48  ;;  %v1418_v8 = vadd.f32 %v1402_v42, %v1365_v41  ;;  %v1143_v33 = vmul.f32 %v2974_v38, %v2710_v5  ;;  %v1158_v57 = vadd.f32 %v1142_v58, %v2962_v23 }
 0x12e   : > { %v3040_v47 = vld [vmem:[#allocation2 + $0x62] sm:$0xff]  ;;  %v1565_v35 = vadd.f32 %v2920_v12, %v1543_v37  ;;  %v1580_v0 = vmax.f32 %v1564_v40, 0.0  ;;  %v789_v63 = vadd.f32 %v2609_v55, %v753_v56  ;;  %v754_v13 = vmul.f32 %v2602_v54, %v679_v59  ;;  %v2237_v14 = vpop.f32.mrb[35].mxu0 }
 0x12f   : > { %v1454_v21 = vmul.f32 %v2752_v32, %v3038_v4  ;;  %v1506_v26 = vmul.f32 %v2882_v19, %v3040_v47  ;;  %v1419_v24 = vadd.f32 %v1403_v1, %v1366_v44  ;;  %v1194_v22 = vmul.f32 %v2959_v28, %v2712_v6 }
 0x130   : > { %v1581_v61 = vmax.f32 %v1565_v35, 0.0  ;;  %v819_v25 = vmax.f32 %v789_v63, 0.0  ;;  %v790_v10 = vadd.f32 %v2609_v55, %v754_v13  ;;  %v1159_v36 = vadd.f32 %v1143_v33, %v1091_v34 }
 0x131   : > { %v1470_v11 = vadd.f32 %v1454_v21, %v1418_v8  ;;  %v1195_v23 = vmul.f32 %v2976_v30, %v2712_v6  ;;  %v1247_v38 = vmul.f32 %v3025_v52, %v2714_v7  ;;  %v1210_v43 = vadd.f32 %v1194_v22, %v1158_v57 }
 0x132   : > { %v1595_v31 = vpack.c.bf16 %v1581_v61, %v1580_v0  ;;  %v1019_v37 = vsel %vm2988_vm6, %v819_v25, 0.0  ;;  %v820_v28 = vmax.f32 %v790_v10, 0.0  ;;  %v3074_v40 = vld [vmem:[#allocation2 + $0x69] sm:$0xff]  ;;  %v1248_v45 = vmul.f32 %v3036_v48, %v2714_v7  ;;  %vm3180_vm6 = vmand %vm3161_vm4, %vm877_vm7 }
 0x133   : > { %v3076_v41 = vld [vmem:[#allocation2 + $0x6a] sm:$0xff]  ;;  %v1522_v42 = vadd.f32 %v1506_v26, %v1470_v11  ;;  %1050 = vst.msk [vmem:[#allocation2 + $0x80] sm:$0xff] %vm1033_vm9, %v1019_v37  ;;  %v684_v56 = vpop.f32.mrb[36].mxu0  ;;  %v1455_v30 = vmul.f32 %v2752_v32, %v3074_v40  ;;  %v1211_v34 = vadd.f32 %v1195_v23, %v1159_v36  ;;  %v1263_v1 = vadd.f32 %v1247_v38, %v1210_v43  ;;  %vm3230_vm7 = vmand %vm3161_vm4, %vm912_vm15 }
 0x134   : > { %2265 = vmatmul.mubr.msk.bf16.vlgmr.msra.gmra.mrb[12].mxu1 %vm1033_vm9, %v1595_v31  ;;  %v1507_v15 = vmul.f32 %v2882_v19, %v3076_v41  ;;  %v1020_v44 = vsel %vm3064_vm12, %v820_v28, 0.0  ;;  %v755_v58 = vmul.f32 %v2602_v54, %v684_v56  ;;  %v2240_v35 = vpop.f32.mrb[37].mxu0  ;;  %v1299_v14 = vmul.f32 %v3038_v4, %v2716_v9  ;;  %v3106_v21 = vld [vmem:[#allocation2 + $0x78] sm:$0xff] }
 0x135   : > { %v1544_v0 = vmul.f32 %v2902_v60, %v1522_v42  ;;  %2281 = vmatpush3.bf16.msra.mxu1 %v2820_v39  ;;  %1051 = vst.msk [vmem:[#allocation2 + $0x88] sm:$0xff] %vm1033_vm9, %v1020_v44  ;;  %v687_v8 = vpop.f32.mrb[38].mxu0  ;;  %v1471_v63 = vadd.f32 %v1455_v30, %v1419_v24  ;;  %v1264_v13 = vadd.f32 %v1248_v45, %v1211_v34 }
 0x136   : > { %v1300_v16 = vmul.f32 %v3074_v40, %v2716_v9  ;;  %v791_v26 = vadd.f32 %v2609_v55, %v755_v58  ;;  %v756_v61 = vmul.f32 %v2602_v54, %v687_v8  ;;  %v2241_v33 = vpop.f32.mrb[39].mxu0  ;;  %v1351_v57 = vmul.f32 %v3040_v47, %v2741_v20 }
 0x137   : > { %v1566_v39 = vadd.f32 %v2920_v12, %v1544_v0  ;;  %v1523_v24 = vadd.f32 %v1507_v15, %v1471_v63  ;;  %v1315_v25 = vadd.f32 %v1299_v14, %v1263_v1  ;;  %v1352_v11 = vmul.f32 %v3076_v41, %v2741_v20 }
 0x138   : > { %v1316_v10 = vadd.f32 %v1300_v16, %v1264_v13  ;;  %v821_v22 = vmax.f32 %v791_v26, 0.0  ;;  %v792_v29 = vadd.f32 %v2609_v55, %v756_v61  ;;  %v1404_v36 = vmul.f32 %v2746_v27, %v3106_v21 }
 0x139   : > { %v1582_v31 = vmax.f32 %v1566_v39, 0.0  ;;  %v1545_v23 = vmul.f32 %v2902_v60, %v1523_v24  ;;  %v1367_v38 = vadd.f32 %v1351_v57, %v1315_v25  ;;  %v1092_v28 = vmul.f32 %v3025_v52, %v2699_v62  ;;  %v3250_v25 = vld [vmem:[#allocation2 + $0xc2] sm:$0xff] }
 0x13a   : > { %v1368_v37 = vadd.f32 %v1352_v11, %v1316_v10  ;;  %v1021_v42 = vsel %vm898_vm1, %v821_v22, 0.0  ;;  %v822_v43 = vmax.f32 %v792_v29, 0.0  ;;  %v3125_v56 = vld [vmem:[#allocation2 + $0x80] sm:$0xff]  ;;  %v1093_v34 = vmul.f32 %v3036_v48, %v2699_v62 }
 0x13b   : > { %v3127_v30 = vld [vmem:[#allocation2 + $0x79] sm:$0xff]  ;;  %v1144_v45 = vmul.f32 %v3038_v4, %v2710_v5  ;;  %1052 = vst.msk [vmem:[#allocation2 + $0x90] sm:$0xff] %vm1033_vm9, %v1021_v42  ;;  %v692_v44 = vpop.f32.mrb[40].mxu0  ;;  %v1567_v58 = vadd.f32 %v2920_v12, %v1545_v23  ;;  %v1405_v52 = vmul.f32 %v2746_v27, %v3125_v56  ;;  %v1420_v35 = vadd.f32 %v1404_v36, %v1367_v38 }
 0x13c   : > { %v3129_v15 = vld [vmem:[#allocation2 + $0x7a] sm:$0xff]  ;;  %v1456_v0 = vmul.f32 %v2752_v32, %v3127_v30  ;;  %v1022_v1 = vsel %vm3095_vm3, %v822_v43, 0.0  ;;  %v757_v48 = vmul.f32 %v2602_v54, %v692_v44  ;;  %v2244_v8 = vpop.f32.mrb[41].mxu0  ;;  %v3146_v4 = vld [vmem:[#allocation2 + $0x82] sm:$0xff]  ;;  %v1145_v14 = vmul.f32 %v3074_v40, %v2710_v5 }
 0x13d   : > { %v3144_v63 = vld [vmem:[#allocation2 + $0x81] sm:$0xff]  ;;  %v1508_v13 = vmul.f32 %v2882_v19, %v3129_v15  ;;  %1053 = vst.msk [vmem:[#allocation2 + $0x98] sm:$0xff] %vm1033_vm9, %v1022_v1  ;;  %v695_v16 = vpop.f32.mrb[42].mxu0  ;;  %v1583_v26 = vmax.f32 %v1567_v58, 0.0  ;;  %v1421_v61 = vadd.f32 %v1405_v52, %v1368_v37  ;;  %v1509_v10 = vmul.f32 %v2882_v19, %v3146_v4 }
 0x13e   : > { %v1457_v33 = vmul.f32 %v2752_v32, %v3144_v63  ;;  %v1472_v39 = vadd.f32 %v1456_v0, %v1420_v35  ;;  %v793_v57 = vadd.f32 %v2609_v55, %v757_v48  ;;  %v758_v24 = vmul.f32 %v2602_v54, %v695_v16  ;;  %v2245_v40 = vpop.f32.mrb[43].mxu0 }
 0x13f   : > { %v1160_v11 = vadd.f32 %v1144_v45, %v1092_v28  ;;  %v1596_v22 = vpack.c.bf16 %v1583_v26, %v1582_v31  ;;  %v1161_v23 = vadd.f32 %v1145_v14, %v1093_v34  ;;  %v1196_v37 = vmul.f32 %v3040_v47, %v2712_v6 }
 0x140   : > { %v1473_v29 = vadd.f32 %v1457_v33, %v1421_v61  ;;  %v1524_v36 = vadd.f32 %v1508_v13, %v1472_v39  ;;  %v823_v38 = vmax.f32 %v793_v57, 0.0  ;;  %v794_v18 = vadd.f32 %v2609_v55, %v758_v24  ;;  %v2345_v24 = vld [vmem:[%s3532_s3] ss:$0 sm:$0xff] }
 0x141   : > { %v1197_v42 = vmul.f32 %v3076_v41, %v2712_v6  ;;  %2268 = vmatprep.mubr.msk.bf16.mxu1 %vm1033_vm9, %v1596_v22  ;;  %v1249_v55 = vmul.f32 %v3106_v21, %v2714_v7  ;;  %v1250_v47 = vmul.f32 %v3125_v56, %v2714_v7  ;;  %v1212_v53 = vadd.f32 %v1196_v37, %v1160_v11 }
 0x142   : > { %v1525_v31 = vadd.f32 %v1509_v10, %v1473_v29  ;;  %v1546_v28 = vmul.f32 %v2902_v60, %v1524_v36  ;;  %v1023_v41 = vsel %vm933_vm5, %v823_v38, 0.0  ;;  %v824_v43 = vmax.f32 %v794_v18, 0.0  ;;  %v3200_v14 = vld [vmem:[#allocation2 + $0x90] sm:$0xff]  ;;  %v2346_v10 = vld [vmem:[%s3531_s2] ss:$0 sm:$0xff] }
 0x143   : > { %v1213_v34 = vadd.f32 %v1197_v42, %v1161_v23  ;;  %1054 = vst.msk [vmem:[#allocation2 + $0xa0] sm:$0xff] %vm1033_vm9, %v1023_v41  ;;  %v700_v45 = vpop.f32.mrb[44].mxu0  ;;  %v1301_v52 = vmul.f32 %v3127_v30, %v2716_v9  ;;  %v1302_v35 = vmul.f32 %v3144_v63, %v2716_v9  ;;  %v1265_v8 = vadd.f32 %v1249_v55, %v1212_v53 }
 0x144   : > { %v1547_v44 = vmul.f32 %v2902_v60, %v1525_v31  ;;  %v1568_v58 = vadd.f32 %v2920_v12, %v1546_v28  ;;  %v1024_v0 = vsel %vm3180_vm6, %v824_v43, 0.0  ;;  %v759_v1 = vmul.f32 %v2602_v54, %v700_v45  ;;  %v2248_v48 = vpop.f32.mrb[45].mxu0  ;;  %v3202_v16 = vld [vmem:[#allocation2 + $0x98] sm:$0xff] }
 0x145   : > { %v1266_v13 = vadd.f32 %v1250_v47, %v1213_v34  ;;  %v3204_v26 = vld [vmem:[#allocation2 + $0x91] sm:$0xff]  ;;  %1055 = vst.msk [vmem:[#allocation2 + $0xa8] sm:$0xff] %vm1033_vm9, %v1024_v0  ;;  %v703_v61 = vpop.f32.mrb[46].mxu0  ;;  %v1353_v57 = vmul.f32 %v3129_v15, %v2741_v20  ;;  %v1354_v54 = vmul.f32 %v3146_v4, %v2741_v20  ;;  %v1317_v29 = vadd.f32 %v1301_v52, %v1265_v8 }
 0x146   : > { %v1569_v33 = vadd.f32 %v2920_v12, %v1547_v44  ;;  %v1584_v39 = vmax.f32 %v1568_v58, 0.0  ;;  %v795_v40 = vadd.f32 %v2345_v24, %v759_v1  ;;  %v760_v11 = vmul.f32 %v2346_v10, %v703_v61  ;;  %v2249_v22 = vpop.f32.mrb[47].mxu0  ;;  %v3218_v23 = vld [vmem:[#allocation2 + $0x92] sm:$0xff] }
 0x147   : > { %v1318_v36 = vadd.f32 %v1302_v35, %v1266_v13  ;;  %v1406_v18 = vmul.f32 %v2746_v27, %v3200_v14  ;;  %v1407_v37 = vmul.f32 %v2746_v27, %v3202_v16  ;;  %v1458_v42 = vmul.f32 %v2752_v32, %v3204_v26 }
 0x148   : > { %v1585_v38 = vmax.f32 %v1569_v33, 0.0  ;;  %v825_v59 = vmax.f32 %v795_v40, 0.0  ;;  %v796_v31 = vadd.f32 %v2345_v24, %v760_v11  ;;  %v1369_v28 = vadd.f32 %v1353_v57, %v1317_v29 }
 0x149   : > { %v1370_v55 = vadd.f32 %v1354_v54, %v1318_v36  ;;  %v1510_v43 = vmul.f32 %v2882_v19, %v3218_v23  ;;  %v1094_v53 = vmul.f32 %v3106_v21, %v2699_v62  ;;  %v1095_v34 = vmul.f32 %v3125_v56, %v2699_v62 }
 0x14a   : > { %v1597_v41 = vpack.c.bf16 %v1585_v38, %v1584_v39  ;;  %v1025_v45 = vsel %vm3161_vm4, %v825_v59, 0.0  ;;  %v826_v2 = vmax.f32 %v796_v31, 0.0  ;;  %v1422_v44 = vadd.f32 %v1406_v18, %v1369_v28  ;;  %v1439_v52 = vld [vmem:[#allocation2 + $0x99] sm:$0xff] }
 0x14b   : > { %v1423_v58 = vadd.f32 %v1407_v37, %v1370_v55  ;;  %v1491_v35 = vld [vmem:[#allocation2 + $0x9a] sm:$0xff]  ;;  %1056 = vst.msk [vmem:[#allocation2 + $0xb0] sm:$0xff] %vm1033_vm9, %v1025_v45  ;;  %v1459_v0 = vmul.f32 %v2752_v32, %v1439_v52  ;;  %v1146_v21 = vmul.f32 %v3127_v30, %v2710_v5  ;;  %v1147_v56 = vmul.f32 %v3144_v63, %v2710_v5 }
 0x14c   : > { %2269 = vmatmul.mubr.msk.bf16.gmra.mrb[16].mxu1 %vm1033_vm9, %v1597_v41  ;;  %v1511_v1 = vmul.f32 %v2882_v19, %v1491_v35  ;;  %v1026_v48 = vsel %vm3230_vm7, %v826_v2, 0.0  ;;  %v1474_v8 = vadd.f32 %v1458_v42, %v1422_v44  ;;  %v1198_v13 = vmul.f32 %v3129_v15, %v2712_v6  ;;  %v1388_v57 = vld [vmem:[#allocation2 + $0xa8] sm:$0xff] }
 0x14d   : > { %v1199_v61 = vmul.f32 %v3146_v4, %v2712_v6  ;;  %1057 = vst.msk [vmem:[#allocation2 + $0xb8] sm:$0xff] %vm1033_vm9, %v1026_v48  ;;  %v1475_v33 = vadd.f32 %v1459_v0, %v1423_v58  ;;  %v1162_v39 = vadd.f32 %v1146_v21, %v1094_v53  ;;  %v1163_v30 = vadd.f32 %v1147_v56, %v1095_v34 }
 0x14e   : > { %v1251_v63 = vmul.f32 %v3200_v14, %v2714_v7  ;;  %v1526_v54 = vadd.f32 %v1510_v43, %v1474_v8  ;;  %v1252_v24 = vmul.f32 %v3202_v16, %v2714_v7  ;;  %v1303_v40 = vmul.f32 %v3204_v26, %v2716_v9 }
 0x14f   : > { %v3267_v15 = vmul.f32 %v2882_v19, %v3250_v25  ;;  %v1527_v4 = vadd.f32 %v1511_v1, %v1475_v33  ;;  %v1214_v10 = vadd.f32 %v1198_v13, %v1162_v39  ;;  %v1215_v11 = vadd.f32 %v1199_v61, %v1163_v30 }
 0x150   : > { %v1304_v22 = vmul.f32 %v1439_v52, %v2716_v9  ;;  %v1548_v29 = vmul.f32 %v2902_v60, %v1526_v54  ;;  %v1355_v36 = vmul.f32 %v3218_v23, %v2741_v20  ;;  %v1356_v38 = vmul.f32 %v1491_v35, %v2741_v20 }
 0x151   : > { %v1408_v18 = vmul.f32 %v2746_v27, %v1388_v57  ;;  %v1549_v37 = vmul.f32 %v2902_v60, %v1527_v4  ;;  %v1267_v42 = vadd.f32 %v1251_v63, %v1214_v10  ;;  %v1268_v59 = vadd.f32 %v1252_v24, %v1215_v11 }
 0x152   : > { %v1096_v31 = vmul.f32 %v3200_v14, %v2699_v62  ;;  %v1570_v28 = vadd.f32 %v2920_v12, %v1548_v29  ;;  %v1389_v55 = vld [vmem:[#allocation2 + $0xb0] sm:$0xff]  ;;  %v1097_v41 = vmul.f32 %v3202_v16, %v2699_v62  ;;  %v1148_v43 = vmul.f32 %v3204_v26, %v2710_v5 }
 0x153   : > { %v1440_v47 = vld [vmem:[#allocation2 + $0xa9] sm:$0xff]  ;;  %v1149_v53 = vmul.f32 %v1439_v52, %v2710_v5  ;;  %v1571_v34 = vadd.f32 %v2920_v12, %v1549_v37  ;;  %v1319_v45 = vadd.f32 %v1303_v40, %v1267_v42  ;;  %v1320_v2 = vadd.f32 %v1304_v22, %v1268_v59 }
 0x154   : > { %v1409_v44 = vmul.f32 %v2746_v27, %v1389_v55  ;;  %v1492_v58 = vld [vmem:[#allocation2 + $0xaa] sm:$0xff]  ;;  %v1586_v14 = vmax.f32 %v1570_v28, 0.0  ;;  %v1460_v1 = vmul.f32 %v2752_v32, %v1440_v47  ;;  %v1164_v21 = vadd.f32 %v1148_v43, %v1096_v31  ;;  %v1493_v8 = vld [vmem:[#allocation2 + $0xb2] sm:$0xff] }
 0x155   : > { %v1441_v0 = vld [vmem:[#allocation2 + $0xb1] sm:$0xff]  ;;  %v1200_v16 = vmul.f32 %v3218_v23, %v2712_v6  ;;  %v1587_v56 = vmax.f32 %v1571_v34, 0.0  ;;  %v1371_v48 = vadd.f32 %v1355_v36, %v1319_v45  ;;  %v1372_v26 = vadd.f32 %v1356_v38, %v1320_v2 }
 0x156   : > { %v1461_v52 = vmul.f32 %v2752_v32, %v1441_v0  ;;  %v1512_v13 = vmul.f32 %v2882_v19, %v1492_v58  ;;  %v1165_v61 = vadd.f32 %v1149_v53, %v1097_v41  ;;  %v1201_v33 = vmul.f32 %v1491_v35, %v2712_v6 }
 0x157   : > { %v1216_v39 = vadd.f32 %v1200_v16, %v1164_v21  ;;  %v1598_v30 = vpack.c.bf16 %v1587_v56, %v1586_v14  ;;  %v1424_v63 = vadd.f32 %v1408_v18, %v1371_v48  ;;  %v1425_v54 = vadd.f32 %v1409_v44, %v1372_v26  ;;  %v1443_v14 = vld [vmem:[#allocation2 + $0xc9] sm:$0xff] }
 0x158   : > { %v1253_v24 = vmul.f32 %v1388_v57, %v2714_v7  ;;  %v1217_v40 = vadd.f32 %v1201_v33, %v1165_v61  ;;  %v1254_v23 = vmul.f32 %v1389_v55, %v2714_v7  ;;  %v1305_v4 = vmul.f32 %v1440_v47, %v2716_v9 }
 0x159   : > { %v1306_v10 = vmul.f32 %v1441_v0, %v2716_v9  ;;  %2272 = vmatprep.mubr.msk.bf16.mxu1 %vm1033_vm9, %v1598_v30  ;;  %v1476_v11 = vadd.f32 %v1460_v1, %v1424_v63  ;;  %v1477_v22 = vadd.f32 %v1461_v52, %v1425_v54  ;;  %v1513_v29 = vmul.f32 %v2882_v19, %v1493_v8 }
 0x15a   : > { %v1269_v35 = vadd.f32 %v1253_v24, %v1216_v39  ;;  %v1270_v36 = vadd.f32 %v1254_v23, %v1217_v40  ;;  %v1357_v38 = vmul.f32 %v1492_v58, %v2741_v20  ;;  %v1358_v18 = vmul.f32 %v1493_v8, %v2741_v20  ;;  %v1444_v23 = vld [vmem:[#allocation2 + $0xd9] sm:$0xff] }
 0x15b   : > { %v1098_v37 = vmul.f32 %v1388_v57, %v2699_v62  ;;  %v1528_v42 = vadd.f32 %v1512_v13, %v1476_v11  ;;  %v1529_v59 = vadd.f32 %v1513_v29, %v1477_v22  ;;  %v1150_v28 = vmul.f32 %v1440_v47, %v2710_v5  ;;  %v1393_v13 = vld [vmem:[#allocation2 + $0xe0] sm:$0xff] }
 0x15c   : > { %v1321_v31 = vadd.f32 %v1305_v4, %v1269_v35  ;;  %v1322_v41 = vadd.f32 %v1306_v10, %v1270_v36  ;;  %v1099_v43 = vmul.f32 %v1389_v55, %v2699_v62  ;;  %v1151_v53 = vmul.f32 %v1441_v0, %v2710_v5  ;;  %v1445_v11 = vld [vmem:[#allocation2 + $0xe1] sm:$0xff] }
 0x15d   : > { %v1202_v34 = vmul.f32 %v1492_v58, %v2712_v6  ;;  %v1550_v45 = vmul.f32 %v2902_v60, %v1528_v42  ;;  %v1551_v2 = vmul.f32 %v2902_v60, %v1529_v59  ;;  %v1166_v1 = vadd.f32 %v1150_v28, %v1098_v37  ;;  %v1495_v58 = vld [vmem:[#allocation2 + $0xca] sm:$0xff]  ;;  %v1496_v29 = vld [vmem:[#allocation2 + $0xda] sm:$0xff]  ;;  %v1497_v36 = vld [vmem:[#allocation2 + $0xe2] sm:$0xff] }
 0x15e   : > { %v1373_v44 = vadd.f32 %v1357_v38, %v1321_v31  ;;  %v1374_v57 = vadd.f32 %v1358_v18, %v1322_v41  ;;  %v1167_v21 = vadd.f32 %v1151_v53, %v1099_v43  ;;  %v1203_v16 = vmul.f32 %v1493_v8, %v2712_v6 }
 0x15f   : > { %v1256_v47 = vmul.f32 %v2806_v17, %v2714_v7  ;;  %v1572_v62 = vadd.f32 %v2920_v12, %v1550_v45  ;;  %v1573_v5 = vadd.f32 %v2920_v12, %v1551_v2  ;;  %v1218_v0 = vadd.f32 %v1202_v34, %v1166_v1 }
 0x160   : > { %v1426_v55 = vadd.f32 %v2834_v46, %v1373_v44  ;;  %v1427_v56 = vadd.f32 %v2849_v49, %v1374_v57  ;;  %v1463_v48 = vmul.f32 %v2752_v32, %v1443_v14  ;;  %v1219_v26 = vadd.f32 %v1203_v16, %v1167_v21  ;;  %v1392_v49 = vld [vmem:[#allocation2 + $0xd8] sm:$0xff] }
 0x161   : > { %v1307_v52 = vmul.f32 %v2836_v50, %v2716_v9  ;;  %v1588_v6 = vmax.f32 %v1572_v62, 0.0  ;;  %v1589_v8 = vmax.f32 %v1573_v5, 0.0  ;;  %v1271_v17 = vadd.f32 %v2852_v51, %v1218_v0  ;;  %v2142_v62 = vld [vmem:[%s2508_s22 + $0x49] sm:$0xff] }
 0x162   : > { %v1478_v7 = vadd.f32 %v2872_v3, %v1426_v55  ;;  %v1479_v61 = vadd.f32 %v1463_v48, %v1427_v56  ;;  %v1515_v46 = vmul.f32 %v2882_v19, %v1495_v58  ;;  %v1272_v33 = vadd.f32 %v1256_v47, %v1219_v26  ;;  %v2140_v47 = vld [vmem:[%s2508_s22 + $0x31] sm:$0xff]  ;;  %v2145_v0 = vld [vmem:[%s2508_s22 + $0x69] sm:$0xff]  ;;  %v2146_v56 = vld [vmem:[%s2508_s22 + $0x79] sm:$0xff] }
 0x163   : > { %v1308_v39 = vmul.f32 %v1443_v14, %v2716_v9  ;;  %v1599_v30 = vpack.c.bf16 %v1589_v8, %v1588_v6  ;;  %v1323_v54 = vadd.f32 %v1307_v52, %v1271_v17  ;;  %v1359_v50 = vmul.f32 %v3250_v25, %v2741_v20  ;;  %v2138_v14 = vld [vmem:[%s2508_s22 + $0x19] sm:$0xff]  ;;  %v2147_v48 = vld [vmem:[%s2508_s22 + $0x81] sm:$0xff]  ;;  %v2148_v6 = vld [vmem:[%s2508_s22 + $0x91] sm:$0xff] }
 0x164   : > { %v1530_v63 = vadd.f32 %v3267_v15, %v1478_v7  ;;  %v1531_v24 = vadd.f32 %v1515_v46, %v1479_v61  ;;  %v1360_v3 = vmul.f32 %v1495_v58, %v2741_v20  ;;  %v1413_v51 = vmul.f32 %v2746_v27, %v1393_v13  ;;  %v2144_v58 = vld [vmem:[%s2508_s22 + $0x61] sm:$0xff]  ;;  %v2149_v8 = vld [vmem:[%s2508_s22 + $0x99] sm:$0xff]  ;;  %v2150_v7 = vld [vmem:[%s2508_s22 + $0xa9] sm:$0xff] }
 0x165   : > { %v1324_v40 = vadd.f32 %v1308_v39, %v1272_v33  ;;  %2273 = vmatmul.mubr.msk.bf16.gmra.mrb[20].mxu1 %vm1033_vm9, %v1599_v30  ;;  %v1375_v9 = vadd.f32 %v1359_v50, %v1323_v54  ;;  %v1412_v10 = vmul.f32 %v2746_v27, %v1392_v49  ;;  %v1464_v20 = vmul.f32 %v2752_v32, %v1444_v23  ;;  %v2151_v17 = vld [vmem:[%s2508_s22 + $0xb1] sm:$0xff]  ;;  %v2152_v46 = vld [vmem:[%s2508_s22 + $0xc1] sm:$0xff]  ;;  %v2153_v33 = vld [vmem:[%s2508_s22 + $0xc9] sm:$0xff] }
 0x166   : > { %v1552_v4 = vmul.f32 %v2902_v60, %v1530_v63  ;;  %v1553_v15 = vmul.f32 %v2902_v60, %v1531_v24  ;;  %v1465_v37 = vmul.f32 %v2752_v32, %v1445_v11  ;;  %v1516_v27 = vmul.f32 %v2882_v19, %v1496_v29  ;;  %v3388_v29 = vld [vmem:[%s3537_s8] ss:$0 sm:$0xff] }
 0x167   : > { %v1376_v22 = vadd.f32 %v1360_v3, %v1324_v40  ;;  %v1428_v35 = vadd.f32 %v1412_v10, %v1375_v9  ;;  %v1517_v41 = vmul.f32 %v2882_v19, %v1497_v36  ;;  %v2139_v19 = vld [vmem:[%s2508_s22 + $0x21] sm:$0xff]  ;;  %v1793_v26 = vpack.c.bf16 %v2145_v0, %v2144_v58 }
 0x168   : > { %v1574_v25 = vadd.f32 %v2920_v12, %v1552_v4  ;;  %v1575_v38 = vadd.f32 %v2920_v12, %v1553_v15  ;;  %v1790_v21 = vpack.c.bf16 %v2139_v19, %v2138_v14  ;;  %v1794_v52 = vpack.c.bf16 %v2147_v48, %v2146_v56 }
 0x169   : > { %v1429_v18 = vadd.f32 %v1413_v51, %v1376_v22  ;;  %v1480_v42 = vadd.f32 %v1464_v20, %v1428_v35  ;;  %v1795_v13 = vpack.c.bf16 %v2149_v8, %v2148_v6  ;;  %v1796_v61 = vpack.c.bf16 %v2151_v17, %v2150_v7  ;;  %v3399_v20 = vld [vmem:[%s3538_s9] ss:$0 sm:$0xff] }
 0x16a   : > { %v1590_v59 = vmax.f32 %v1574_v25, 0.0  ;;  %v1591_v31 = vmax.f32 %v1575_v38, 0.0  ;;  %v1797_v39 = vpack.c.bf16 %v2153_v33, %v2152_v46  ;;  %v3393_v25 = vld [vmem:[%s3540_s11] ss:$0 sm:$0xff] }
 0x16b   : > { %v1481_v28 = vadd.f32 %v1465_v37, %v1429_v18  ;;  %v1532_v43 = vadd.f32 %v1516_v27, %v1480_v42  ;;  %v3405_v38 = vld [vmem:[%s3541_s12] ss:$0 sm:$0xff] }
 0x16c   : > { %v1600_v53 = vpack.c.bf16 %v1591_v31, %v1590_v59 }
 0x16d   : > { %v1533_v34 = vadd.f32 %v1517_v41, %v1481_v28  ;;  %v1554_v45 = vmul.f32 %v2902_v60, %v1532_v43 }
 0x16e   : > { %2276 = vmatprep.mubr.msk.bf16.mxu1 %vm1033_vm9, %v1600_v53 }
 0x16f   : > { %v1555_v32 = vmul.f32 %v2902_v60, %v1533_v34  ;;  %v1576_v2 = vadd.f32 %v2920_v12, %v1554_v45  ;;  %v2141_v60 = vld [vmem:[%s2508_s22 + $0x39] sm:$0xff] }
 0x170   : > { %v1791_v5 = vpack.c.bf16 %v2141_v60, %v2140_v47 }
 0x171   : > { %v1577_v44 = vadd.f32 %v2920_v12, %v1555_v32  ;;  %v1592_v1 = vmax.f32 %v1576_v2, 0.0  ;;  %v2143_v12 = vld [vmem:[%s2508_s22 + $0x51] sm:$0xff]  ;;  %s2101_s22 = sshll.u32 %s3602_s17, 1 }
 0x172   : > { %v1792_v55 = vpack.c.bf16 %v2143_v12, %v2142_v62  ;;  %s462_s19 = sadd.s32 %s2102_s15, %s2101_s22 }
 0x173   : > { %v1593_v57 = vmax.f32 %v1577_v44, 0.0  ;;  %s2103_s24 = sshll.u32 %s462_s19, 3 }
 0x174   : > { %s3417_s16 = scalar_lea.vmem %s3542_s13, %s2103_s24 }
 0x175   : > { %v1601_v16 = vpack.c.bf16 %v1593_v57, %v1592_v1 }
 0x177   : > { %2277 = vmatmul.mubr.msk.bf16.gmra.mrb[24].mxu1 %vm1033_vm9, %v1601_v16 }
 0x178   : > { %2282 = vmatprep.mubr.msk.bf16.mxu1 %vm528_vm2, %v1790_v21 }
 0x17f   : > { %2283 = vmatmul.mubr.msk.bf16.vlgmr.msra.gmra.mrb[28].mxu1 %vm528_vm2, %v1791_v5 }
 0x180   : > { %2286 = vmatprep.mubr.msk.bf16.mxu1 %vm528_vm2, %v1792_v55 }
 0x187   : > { %2287 = vmatmul.mubr.msk.bf16.gmra.mrb[32].mxu1 %vm528_vm2, %v1793_v26 }
 0x188   : > { %2290 = vmatprep.mubr.msk.bf16.mxu1 %vm528_vm2, %v1794_v52 }
 0x18f   : > { %2291 = vmatmul.mubr.msk.bf16.gmra.mrb[36].mxu1 %vm528_vm2, %v1795_v13 }
 0x190   : > { %2294 = vmatprep.mubr.msk.bf16.mxu1 %vm528_vm2, %v1796_v61 }
 0x197   : > { %2295 = vmatmul.mubr.msk.bf16.gmra.mrb[40].mxu1 %vm528_vm2, %v1797_v39 }
 0x207   : > { %v2266_v49 = vpop.f32.mrb[12].mxu1 }
 0x208   : > { %v1664_v30 = vpop.f32.mrb[13].mxu1  ;;  %v1735_v35 = vmul.f32 %v2266_v49, %v3388_v29 }
 0x209   : > { %v2267_v63 = vpop.f32.mrb[14].mxu1  ;;  %v1733_v36 = vmul.f32 %v3388_v29, %v1664_v30 }
 0x20a   : > { %v1667_v54 = vpop.f32.mrb[15].mxu1  ;;  %v1736_v37 = vmul.f32 %v2267_v63, %v3388_v29  ;;  %v1757_v41 = vadd.f32 %v3399_v20, %v1735_v35 }
 0x20b   : > { %v1734_v59 = vmul.f32 %v3388_v29, %v1667_v54  ;;  %v1755_v45 = vadd.f32 %v3399_v20, %v1733_v36 }
 0x20c   : > { %v1758_v44 = vadd.f32 %v3399_v20, %v1736_v37 }
 0x20d   : > { %v1756_v1 = vadd.f32 %v3399_v20, %v1734_v59 }
 0x21f   : > { %v2270_v50 = vpop.f32.mrb[16].mxu1 }
 0x220   : > { %v1680_v24 = vpop.f32.mrb[17].mxu1  ;;  %v1739_v16 = vmul.f32 %v2270_v50, %v3388_v29 }
 0x221   : > { %v2271_v40 = vpop.f32.mrb[18].mxu1  ;;  %v1737_v60 = vmul.f32 %v3388_v29, %v1680_v24 }
 0x222   : > { %v1683_v3 = vpop.f32.mrb[19].mxu1  ;;  %v1740_v5 = vmul.f32 %v2271_v40, %v3388_v29  ;;  %v1761_v26 = vadd.f32 %v3399_v20, %v1739_v16 }
 0x223   : > { %v1738_v0 = vmul.f32 %v3388_v29, %v1683_v3  ;;  %v1759_v7 = vadd.f32 %v3399_v20, %v1737_v60 }
 0x224   : > { %v1762_v61 = vadd.f32 %v3399_v20, %v1740_v5 }
 0x225   : > { %v1760_v39 = vadd.f32 %v3399_v20, %v1738_v0 }
 0x238   : > { %v3366_v51 = vpop.f32.mrb[20].mxu1 }
 0x239   : > { %v3368_v23 = vpop.f32.mrb[21].mxu1  ;;  %v1743_v63 = vmul.f32 %v3366_v51, %v3388_v29 }
 0x23a   : > { %v3370_v4 = vpop.f32.mrb[22].mxu1  ;;  %v1741_v50 = vmul.f32 %v3388_v29, %v3368_v23 }
 0x23b   : > { %v3372_v9 = vpop.f32.mrb[23].mxu1  ;;  %v1744_v3 = vmul.f32 %v3370_v4, %v3388_v29  ;;  %v1765_v37 = vadd.f32 %v3399_v20, %v1743_v63 }
 0x23c   : > { %v1742_v51 = vmul.f32 %v3388_v29, %v3372_v9  ;;  %v1763_v59 = vadd.f32 %v3399_v20, %v1741_v50 }
 0x24a   : > { %v3376_v10 = vpop.f32.mrb[24].mxu1 }
 0x24b   : > { %v3378_v11 = vpop.f32.mrb[25].mxu1 }
 0x24c   : > { %v3380_v15 = vpop.f32.mrb[26].mxu1 }
 0x24d   : > { %v3383_v22 = vpop.f32.mrb[27].mxu1 }
 0x252   : > { %v2284_v18 = vpop.f32.mrb[28].mxu1 }
 0x253   : > { %v1930_v42 = vmul.f32 %v2284_v18, %v3393_v25  ;;  %v1859_v27 = vpop.f32.mrb[29].mxu1 }
 0x254   : > { %v1928_v31 = vmul.f32 %v3393_v25, %v1859_v27  ;;  %v2285_v28 = vpop.f32.mrb[30].mxu1 }
 0x255   : > { %v1952_v43 = vadd.f32 %v3405_v38, %v1930_v42  ;;  %v1931_v53 = vmul.f32 %v2285_v28, %v3393_v25  ;;  %v1862_v34 = vpop.f32.mrb[31].mxu1  ;;  %v1766_v28 = vadd.f32 %v3399_v20, %v1744_v3 }
 0x256   : > { %v1950_v32 = vadd.f32 %v3405_v38, %v1928_v31  ;;  %v1929_v2 = vmul.f32 %v3393_v25, %v1862_v34 }
 0x257   : > { %v1968_v14 = vadd.f32 %v1952_v43, %v1757_v41  ;;  %v1953_v19 = vadd.f32 %v3405_v38, %v1931_v53  ;;  %v1764_v53 = vadd.f32 %v3399_v20, %v1742_v51 }
 0x258   : > { %v1966_v57 = vadd.f32 %v1950_v32, %v1755_v45  ;;  %v1951_v21 = vadd.f32 %v3405_v38, %v1929_v2  ;;  %v1747_v32 = vmul.f32 %v3376_v10, %v3388_v29  ;;  %v1746_v10 = vmul.f32 %v3388_v29, %v3383_v22 }
 0x259   : > { %1984 = vst.msk [vmem:[%s3417_s16 + $0x10] sm:$0xff] %vm1033_vm9, %v1968_v14  ;;  %v1969_v47 = vadd.f32 %v1953_v19, %v1758_v44  ;;  %v1745_v44 = vmul.f32 %v3388_v29, %v3378_v11 }
 0x25a   : > { %1982 = vst.msk [vmem:[%s3417_s16] sm:$0xff] %vm1033_vm9, %v1966_v57  ;;  %v1967_v62 = vadd.f32 %v1951_v21, %v1756_v1  ;;  %v2288_v12 = vpop.f32.mrb[32].mxu1  ;;  %v1748_v1 = vmul.f32 %v3380_v15, %v3388_v29  ;;  %v1768_v0 = vadd.f32 %v3399_v20, %v1746_v10 }
 0x25b   : > { %1985 = vst.msk [vmem:[%s3417_s16 + $0x18] sm:$0xff] %vm1033_vm9, %v1969_v47  ;;  %v1934_v55 = vmul.f32 %v2288_v12, %v3393_v25  ;;  %v1875_v58 = vpop.f32.mrb[33].mxu1  ;;  %v1769_v47 = vadd.f32 %v3399_v20, %v1747_v32  ;;  %v1767_v12 = vadd.f32 %v3399_v20, %v1745_v44 }
 0x25c   : > { %1983 = vst.msk [vmem:[%s3417_s16 + $0x8] sm:$0xff] %vm1033_vm9, %v1967_v62  ;;  %v1932_v56 = vmul.f32 %v3393_v25, %v1875_v58  ;;  %v2289_v48 = vpop.f32.mrb[34].mxu1  ;;  %v1770_v5 = vadd.f32 %v3399_v20, %v1748_v1 }
 0x25d   : > { %v1956_v52 = vadd.f32 %v3405_v38, %v1934_v55  ;;  %v1935_v6 = vmul.f32 %v2289_v48, %v3393_v25  ;;  %v1878_v8 = vpop.f32.mrb[35].mxu1 }
 0x25e   : > { %v1954_v17 = vadd.f32 %v3405_v38, %v1932_v56  ;;  %v1933_v13 = vmul.f32 %v3393_v25, %v1878_v8 }
 0x25f   : > { %v1972_v46 = vadd.f32 %v1956_v52, %v1761_v26  ;;  %v1957_v33 = vadd.f32 %v3405_v38, %v1935_v6 }
 0x260   : > { %v1970_v49 = vadd.f32 %v1954_v17, %v1759_v7  ;;  %v1955_v30 = vadd.f32 %v3405_v38, %v1933_v13 }
 0x261   : > { %1988 = vst.msk [vmem:[%s3417_s16 + $0x30] sm:$0xff] %vm1033_vm9, %v1972_v46  ;;  %v1973_v54 = vadd.f32 %v1957_v33, %v1762_v61 }
 0x262   : > { %1986 = vst.msk [vmem:[%s3417_s16 + $0x20] sm:$0xff] %vm1033_vm9, %v1970_v49  ;;  %v1971_v24 = vadd.f32 %v1955_v30, %v1760_v39  ;;  %v2292_v40 = vpop.f32.mrb[36].mxu1 }
 0x263   : > { %1989 = vst.msk [vmem:[%s3417_s16 + $0x38] sm:$0xff] %vm1033_vm9, %v1973_v54  ;;  %v1938_v35 = vmul.f32 %v2292_v40, %v3393_v25  ;;  %v1891_v36 = vpop.f32.mrb[37].mxu1 }
 0x264   : > { %1987 = vst.msk [vmem:[%s3417_s16 + $0x28] sm:$0xff] %vm1033_vm9, %v1971_v24  ;;  %v1936_v18 = vmul.f32 %v3393_v25, %v1891_v36  ;;  %v2293_v23 = vpop.f32.mrb[38].mxu1 }
 0x265   : > { %v1960_v42 = vadd.f32 %v3405_v38, %v1938_v35  ;;  %v1939_v4 = vmul.f32 %v2293_v23, %v3393_v25  ;;  %v1894_v27 = vpop.f32.mrb[39].mxu1 }
 0x266   : > { %v1958_v31 = vadd.f32 %v3405_v38, %v1936_v18  ;;  %v1937_v9 = vmul.f32 %v3393_v25, %v1894_v27 }
 0x267   : > { %v1976_v41 = vadd.f32 %v1960_v42, %v1765_v37  ;;  %v1961_v43 = vadd.f32 %v3405_v38, %v1939_v4 }
 0x268   : > { %v1974_v34 = vadd.f32 %v1958_v31, %v1763_v59  ;;  %v1959_v45 = vadd.f32 %v3405_v38, %v1937_v9 }
 0x269   : > { %1992 = vst.msk [vmem:[%s3417_s16 + $0x50] sm:$0xff] %vm1033_vm9, %v1976_v41  ;;  %v1977_v2 = vadd.f32 %v1961_v43, %v1766_v28 }
 0x26a   : > { %1990 = vst.msk [vmem:[%s3417_s16 + $0x40] sm:$0xff] %vm1033_vm9, %v1974_v34  ;;  %v1975_v14 = vadd.f32 %v1959_v45, %v1764_v53  ;;  %v2296_v19 = vpop.f32.mrb[40].mxu1 }
 0x26b   : > { %1993 = vst.msk [vmem:[%s3417_s16 + $0x58] sm:$0xff] %vm1033_vm9, %v1977_v2  ;;  %v1942_v57 = vmul.f32 %v2296_v19, %v3393_v25  ;;  %v1907_v21 = vpop.f32.mrb[41].mxu1 }
 0x26c   : > { %1991 = vst.msk [vmem:[%s3417_s16 + $0x48] sm:$0xff] %vm1033_vm9, %v1975_v14  ;;  %v1940_v11 = vmul.f32 %v3393_v25, %v1907_v21  ;;  %v2297_v16 = vpop.f32.mrb[42].mxu1 }
 0x26d   : > { %v1964_v60 = vadd.f32 %v3405_v38, %v1942_v57  ;;  %v1943_v15 = vmul.f32 %v2297_v16, %v3393_v25  ;;  %v1910_v62 = vpop.f32.mrb[43].mxu1 }
 0x26e   : > { %v1962_v22 = vadd.f32 %v3405_v38, %v1940_v11  ;;  %v1941_v29 = vmul.f32 %v3393_v25, %v1910_v62 }
 0x26f   : > { %v1980_v55 = vadd.f32 %v1964_v60, %v1769_v47  ;;  %v1965_v58 = vadd.f32 %v3405_v38, %v1943_v15 }
 0x270   : > { %v1978_v56 = vadd.f32 %v1962_v22, %v1767_v12  ;;  %v1963_v48 = vadd.f32 %v3405_v38, %v1941_v29 }
 0x271   : > { %1996 = vst.msk [vmem:[%s3417_s16 + $0x70] sm:$0xff] %vm1033_vm9, %v1980_v55  ;;  %v1981_v26 = vadd.f32 %v1965_v58, %v1770_v5 }
 0x272   : > { %1994 = vst.msk [vmem:[%s3417_s16 + $0x60] sm:$0xff] %vm1033_vm9, %v1978_v56  ;;  %v1979_v52 = vadd.f32 %v1963_v48, %v1768_v0 }
 0x273   : > { %1997 = vst.msk [vmem:[%s3417_s16 + $0x78] sm:$0xff] %vm1033_vm9, %v1981_v26 }
 0x274   : > { %1995 = vst.msk [vmem:[%s3417_s16 + $0x68] sm:$0xff] %vm1033_vm9, %v1979_v52 }
 0x275 PF: > { %s23_s29 = sadd.s32 1, %s2385_s29   ;;  %s3589_s25 = smov %s2377_s27 }
 0x276   : > { %p20_p7 = scmp.ge.s32.totalorder %s23_s29, 6   ;;  %s3590_s26 = smov %s2381_s28 }
 0x277   : > { %s3591_s27 = smov %s3594_s30  ;;  %s3592_s28 = smov %s3598_s14 }
 0x278   :  { %22 = sbr.rel (!%p20_p7) target bundleno = 3 (0x3), region = 106 }

</bundles_post_ra>
